<compile_context>
chip_gen: v7x
topology: tpu7x:2x2x1
jax: 0.10.0
libtpu: 0.0.40
codegen_flags: <defaults>
</compile_context>

<pallas_src>
import functools

import numpy as np
import jax
import jax.numpy as jnp
from jax import lax
from jax.experimental import pallas as pl
from jax.experimental.pallas import tpu as pltpu


LANE = 128        # feature (lane) padding target
ROW_TILE = 128    # rows of the similarity space per grid step


def _round_up(x, m):
    return ((x + m - 1) // m) * m


# --------------------- projection: a = text @ W^T (bias-free Linear) ---------------------

def _proj_kernel(text_ref, w_ref, out_ref):
    out_ref[...] = jnp.dot(
        text_ref[...], w_ref[...], preferred_element_type=jnp.float32
    ).astype(out_ref.dtype)


def _project(text_emb, w_t, *, row_tile=ROW_TILE):
    n_max, d_in = text_emb.shape
    d_out = w_t.shape[1]
    return pl.pallas_call(
        _proj_kernel,
        out_shape=jax.ShapeDtypeStruct((n_max, d_out), jnp.bfloat16),
        grid=(n_max // row_tile,),
        in_specs=[
            pl.BlockSpec((row_tile, d_in), lambda i: (i, 0)),
            pl.BlockSpec((d_in, d_out), lambda i: (0, 0)),   # weight resident
        ],
        out_specs=pl.BlockSpec((row_tile, d_out), lambda i: (i, 0)),
        compiler_params=pltpu.CompilerParams(
            dimension_semantics=("parallel",),
        ),
    )(text_emb, w_t)


# --------------------------- fused InfoNCE (both halves per row) ---------------------------
# For each valid row i the kernel emits:
#   [ LSE_j( {a_i.b_j/T : j valid} U {a_i.a_j/T : j valid, j != i} ) - a_i.b_i/T ]   (half 1)
# + [ LSE_j( {b_i.b_j/T : j valid, j != i} U {b_i.a_j/T : j valid} ) - a_i.b_i/T ]   (half 2)
# InfoNCE loss = sum over valid rows / (2 * n_valid).

def _nce_kernel(nv_ref, a_ref, b_ref, out_ref, *, temperature, row_tile):
    n_max = a_ref.shape[0]
    nv = nv_ref[0]                                       # number of valid rows (SMEM scalar)
    r0 = pl.multiple_of(pl.program_id(0) * row_tile, row_tile)

    a_t = a_ref[pl.ds(r0, row_tile), :]                  # [tr, d] bf16 (VMEM-resident slice)
    b_t = b_ref[pl.ds(r0, row_tile), :]

    inv_t = jnp.float32(1.0 / temperature)
    dn = (((1,), (1,)), ((), ()))                        # contract feature axis: X @ Y.T
    # bf16 operands -> f32 accumulation on the MXU
    s_ab = lax.dot_general(a_t, b_ref[...], dn,
                           preferred_element_type=jnp.float32) * inv_t   # [tr, n_max]
    s_aa = lax.dot_general(a_t, a_ref[...], dn,
                           preferred_element_type=jnp.float32) * inv_t   # [tr, n_max]
    s_bb = lax.dot_general(b_t, b_ref[...], dn,
                           preferred_element_type=jnp.float32) * inv_t   # [tr, n_max]
    s_ba = lax.dot_general(b_t, a_ref[...], dn,
                           preferred_element_type=jnp.float32) * inv_t   # [tr, n_max]

    # Positive logit a_i.b_i/T is shared by both halves (no n^2 diagonal extraction).
    pos = jnp.sum(a_t.astype(jnp.float32) * b_t.astype(jnp.float32),
                  axis=1, keepdims=True) * inv_t                          # [tr, 1]

    row_ids = r0 + lax.broadcasted_iota(jnp.int32, (row_tile, 1), 0)      # [tr, 1]
    col_ids = lax.broadcasted_iota(jnp.int32, (1, n_max), 1)              # [1, n_max]
    col_valid = col_ids < nv
    keep_diag = jnp.logical_and(col_valid, col_ids != row_ids)            # mask diag + pad

    # Unmasked row max is a valid (finite) upper bound -> LSE stays exact; masking is
    # applied once, after the exp pass (no -inf writes, no NaN for padded rows).
    m1 = jnp.maximum(jnp.max(s_ab, axis=1, keepdims=True),
                     jnp.max(s_aa, axis=1, keepdims=True))                # [tr, 1]
    e1 = jnp.where(col_valid, jnp.exp(s_ab - m1), 0.0)
    e1x = jnp.where(keep_diag, jnp.exp(s_aa - m1), 0.0)
    lse1 = m1 + jnp.log(jnp.sum(e1, axis=1, keepdims=True)
                        + jnp.sum(e1x, axis=1, keepdims=True))

    m2 = jnp.maximum(jnp.max(s_bb, axis=1, keepdims=True),
                     jnp.max(s_ba, axis=1, keepdims=True))                # [tr, 1]
    e2 = jnp.where(keep_diag, jnp.exp(s_bb - m2), 0.0)
    e2x = jnp.where(col_valid, jnp.exp(s_ba - m2), 0.0)
    lse2 = m2 + jnp.log(jnp.sum(e2, axis=1, keepdims=True)
                        + jnp.sum(e2x, axis=1, keepdims=True))

    row_valid = row_ids < nv
    out_ref[...] = jnp.where(row_valid, (lse1 - pos) + (lse2 - pos), 0.0)  # padded rows -> 0


def _nce_rows(n_valid, a, b, *, temperature, row_tile=ROW_TILE):
    n_max, d = a.shape
    kernel = functools.partial(_nce_kernel,
                               temperature=float(temperature), row_tile=row_tile)
    return pl.pallas_call(
        kernel,
        out_shape=jax.ShapeDtypeStruct((n_max, 1), jnp.float32),
        grid_spec=pltpu.PrefetchScalarGridSpec(
            num_scalar_prefetch=1,                       # n_valid -> SMEM
            grid=(n_max // row_tile,),
            in_specs=[
                pl.BlockSpec((n_max, d), lambda i, nv: (0, 0)),   # a fully resident (bf16)
                pl.BlockSpec((n_max, d), lambda i, nv: (0, 0)),   # b fully resident (bf16)
            ],
            out_specs=pl.BlockSpec((row_tile, 1), lambda i, nv: (i, 0)),
        ),
        compiler_params=pltpu.CompilerParams(
            dimension_semantics=("parallel",),           # shard row tiles across v7x TCs
            vmem_limit_bytes=48 * 1024 * 1024,           # headroom for large n (< v7x 64MiB)
        ),
    )(n_valid, a, b)


# ----------------------------------- module + jit glue -----------------------------------

@functools.partial(jax.jit, static_argnums=(4, 5))
def _forward_impl(items, text_weight_p, w_t_p, cf_table, temperature, d_out_p):
    flat = items.reshape(-1).astype(jnp.int32)
    valid = flat != 0
    n_valid = jnp.sum(valid).astype(jnp.int32)

    # Compact valid ids to the front (loss is row-permutation invariant; the same
    # permutation is applied to both gathers so positive pairs stay aligned).
    order = jnp.argsort(jnp.logical_not(valid).astype(jnp.int32))
    ids = jnp.where(valid, flat - 1, 0)[order]           # padded slots -> id 0 (masked)

    n_max = _round_up(max(int(flat.shape[0]), 1), ROW_TILE)
    ids = jnp.pad(ids, (0, n_max - flat.shape[0]))

    text_emb = jnp.take(text_weight_p, ids, axis=0)      # [n_max, d_in_p]  bf16

    # Gather first, then pad/cast only the n_max gathered rows (not the whole table).
    cf_rows = jnp.take(cf_table, ids, axis=0).astype(jnp.float32)
    cf_emb = jnp.pad(cf_rows, ((0, 0), (0, d_out_p - cf_table.shape[1]))
                     ).astype(jnp.bfloat16)              # [n_max, d_out_p] bf16

    a = _project(text_emb, w_t_p)                        # [n_max, d_out_p] bf16

    nv = jnp.reshape(n_valid, (1,))
    rows = _nce_rows(nv, a, cf_emb, temperature=temperature)   # [n_max, 1] f32
    loss = jnp.sum(rows) / (2.0 * n_valid.astype(jnp.float32))
    return loss


class ProjectionModuleJAX:
    """JAX/Pallas port of ProjectionModule. Parameters initialized deterministically."""

    def __init__(self, text_weight, proj_in_size, proj_out_size, temperature, key):
        self.temperature = float(temperature)
        self.proj_in = int(proj_in_size)
        self.proj_out = int(proj_out_size)
        self.d_in_p = _round_up(self.proj_in, LANE)
        self.d_out_p = _round_up(self.proj_out, LANE)

        # Frozen text-feature matrix, zero-padded on the feature (lane) axis, bf16 operands.
        tw = jnp.asarray(text_weight, jnp.float32)
        self.text_weight = jnp.pad(
            tw, ((0, 0), (0, self.d_in_p - self.proj_in))).astype(jnp.bfloat16)

        # xavier_normal_ on nn.Linear weight [proj_out, proj_in]; stored transposed + padded.
        std = float(np.sqrt(2.0 / (self.proj_in + self.proj_out)))
        w = jax.random.normal(key, (self.proj_out, self.proj_in), jnp.float32) * std
        w_t = jnp.pad(w.T, ((0, self.d_in_p - self.proj_in),
                            (0, self.d_out_p - self.proj_out)))
        self.w_t = w_t.astype(jnp.bfloat16)

    def forward(self, items, cf_embedding_table):
        return _forward_impl(items, self.text_weight, self.w_t,
                             jnp.asarray(cf_embedding_table),
                             self.temperature, self.d_out_p)


# --------------------------------- pure-numpy reference ---------------------------------

def _reference_loss(items, text_weight_bf16, w_t_bf16, cf_table, temperature):
    it = np.asarray(items).reshape(-1)
    it = it[it != 0] - 1
    tw = np.asarray(text_weight_bf16.astype(jnp.float32))
    wt = np.asarray(w_t_bf16.astype(jnp.float32))
    d_out_p = wt.shape[1]
    cf = np.asarray(cf_table, np.float32)
    cf_p = np.zeros((cf.shape[0], d_out_p), np.float32)
    cf_p[:, :cf.shape[1]] = cf
    cf_p = np.asarray(jnp.asarray(cf_p).astype(jnp.bfloat16).astype(jnp.float32))

    a = tw[it] @ wt
    a = np.asarray(jnp.asarray(a).astype(jnp.bfloat16).astype(jnp.float32))
    b = cf_p[it]
    n = a.shape[0]
    invt = 1.0 / float(temperature)
    sim12 = (a @ b.T) * invt
    sim11 = (a @ a.T) * invt
    sim22 = (b @ b.T) * invt
    np.fill_diagonal(sim11, -np.inf)
    np.fill_diagonal(sim22, -np.inf)
    logits = np.concatenate(
        [np.concatenate([sim12, sim11], axis=1),
         np.concatenate([sim22, sim12.T], axis=1)], axis=0)
    m = logits.max(axis=1, keepdims=True)
    lse = m[:, 0] + np.log(np.exp(logits - m).sum(axis=1))
    pos = logits[np.arange(2 * n), np.arange(2 * n)]
    return float(np.mean(lse - pos))


if __name__ == "__main__":
    num_items = 20
    proj_in_size = 32
    proj_out_size = 16
    temperature = 1.0

    key = jax.random.PRNGKey(0)
    k_text, k_proj, k_cf = jax.random.split(key, 3)

    # text_weight passed into the module (frozen text-feature matrix).
    text_weight = jax.random.normal(k_text, (num_items, proj_in_size), jnp.float32)
    # cf_embeddings == nn.Embedding(num_items, proj_out_size) weight table.
    cf_embedding_table = jax.random.normal(k_cf, (num_items, proj_out_size), jnp.float32)

    module = ProjectionModuleJAX(text_weight, proj_in_size, proj_out_size, temperature, k_proj)

    # Padded item-id batch (0 = padding), ids in [1, num_items].
    items = jnp.array(
        [[3, 5, 0, 7, 2, 0, 9, 1],
         [4, 0, 6, 8, 0, 10, 11, 12]], dtype=jnp.int32)

    loss = module.forward(items, cf_embedding_table)
    loss = jax.block_until_ready(loss)
    loss_f = float(loss)

    ref = _reference_loss(items, module.text_weight, module.w_t,
                          cf_embedding_table, temperature)

    assert np.isfinite(loss_f), f"loss not finite: {loss_f}"
    np.testing.assert_allclose(loss_f, ref, rtol=2e-2, atol=2e-2)
    print("KERNEL_OK")
</pallas_src>

<mosaic_0001>
module attributes {stable_mosaic.version = 11 : i64} {
  func.func @_proj_kernel(%arg0: i32, %arg1: memref<128x128xbf16, #tpu.memory_space<vmem>>, %arg2: memref<128x128xbf16, #tpu.memory_space<vmem>>, %arg3: memref<128x128xbf16, #tpu.memory_space<vmem>>) attributes {dimension_semantics = [#tpu.dimension_semantics<parallel>], iteration_bounds = array<i64: 1>, scalar_prefetch = 0 : i64, scratch_operands = 0 : i64, tpu.core_type = #tpu.core_type<tc>, window_params = [{transform_indices = @transform_0, window_bounds = array<i64: 128, 128>}, {pipeline_mode = #tpu.pipeline_mode<synchronous>, transform_indices = @transform_1, window_bounds = array<i64: 128, 128>}, {transform_indices = @transform_2, window_bounds = array<i64: 128, 128>}]} {
    %c0 = arith.constant 0 : index
    %c0_0 = arith.constant 0 : index
    %0 = vector.load %arg1[%c0, %c0_0] : memref<128x128xbf16, #tpu.memory_space<vmem>>, vector<128x128xbf16>
    %c0_1 = arith.constant 0 : index
    %c0_2 = arith.constant 0 : index
    %1 = vector.load %arg2[%c0_1, %c0_2] : memref<128x128xbf16, #tpu.memory_space<vmem>>, vector<128x128xbf16>
    %cst = arith.constant dense<0.000000e+00> : vector<128x128xf32>
    %2 = tpu.matmul %0, %1, %cst {dimension_numbers = #tpu.dot_dimension_numbers<[1], [0], [0], [1], [0, 0, 1, 1], [], []>} : vector<128x128xbf16>, vector<128x128xbf16>, vector<128x128xf32> -> vector<128x128xf32>
    %3 = arith.truncf %2 : vector<128x128xf32> to vector<128x128xbf16>
    %c0_3 = arith.constant 0 : index
    %c0_4 = arith.constant 0 : index
    %4 = vector.load %arg3[%c0_3, %c0_4] : memref<128x128xbf16, #tpu.memory_space<vmem>>, vector<128x128xbf16>
    tpu.vector_store %arg3[%c0_3, %c0_4], %3 {strides = array<i32>} : memref<128x128xbf16, #tpu.memory_space<vmem>>, vector<128x128xbf16>,
    return
  }
  func.func @transform_0(%arg0: i32) -> (i32, i32) {
    %c0_i32 = arith.constant 0 : i32
    %c0_i32_0 = arith.constant 0 : i32
    return %arg0, %c0_i32 : i32, i32
  }
  func.func @transform_1(%arg0: i32) -> (i32, i32) {
    %c0_i32 = arith.constant 0 : i32
    %c0_i32_0 = arith.constant 0 : i32
    %c0_i32_1 = arith.constant 0 : i32
    return %c0_i32, %c0_i32_0 : i32, i32
  }
  func.func @transform_2(%arg0: i32) -> (i32, i32) {
    %c0_i32 = arith.constant 0 : i32
    %c0_i32_0 = arith.constant 0 : i32
    return %arg0, %c0_i32 : i32, i32
  }
}

module attributes {stable_mosaic.version = 11 : i64} {
  func.func @_nce_kernel(%arg0: i32, %arg1: memref<1xi32, #tpu.memory_space<smem>>, %arg2: memref<128x128xbf16, #tpu.memory_space<vmem>>, %arg3: memref<128x128xbf16, #tpu.memory_space<vmem>>, %arg4: memref<128x1xf32, #tpu.memory_space<vmem>>) attributes {dimension_semantics = [#tpu.dimension_semantics<parallel>], iteration_bounds = array<i64: 1>, scalar_prefetch = 1 : i64, scratch_operands = 0 : i64, tpu.core_type = #tpu.core_type<tc>, window_params = [{pipeline_mode = #tpu.pipeline_mode<synchronous>, transform_indices = @transform_0, window_bounds = array<i64: 128, 128>}, {pipeline_mode = #tpu.pipeline_mode<synchronous>, transform_indices = @transform_1, window_bounds = array<i64: 128, 128>}, {transform_indices = @transform_2, window_bounds = array<i64: 128, 1>}]} {
    %c0 = arith.constant 0 : index
    %0 = memref.load %arg1[%c0] : memref<1xi32, #tpu.memory_space<smem>>
    %c128_i32 = arith.constant 128 : i32
    %1 = arith.muli %arg0, %c128_i32 : i32
    %2 = tpu.assume_multiple %1, 128 : i32
    %3 = arith.index_cast %2 : i32 to index
    %c0_0 = arith.constant 0 : index
    %4 = vector.load %arg2[%3, %c0_0] : memref<128x128xbf16, #tpu.memory_space<vmem>>, vector<128x128xbf16>
    %5 = arith.index_cast %2 : i32 to index
    %c0_1 = arith.constant 0 : index
    %6 = vector.load %arg3[%5, %c0_1] : memref<128x128xbf16, #tpu.memory_space<vmem>>, vector<128x128xbf16>
    %c0_2 = arith.constant 0 : index
    %c0_3 = arith.constant 0 : index
    %7 = vector.load %arg3[%c0_2, %c0_3] : memref<128x128xbf16, #tpu.memory_space<vmem>>, vector<128x128xbf16>
    %cst = arith.constant dense<0.000000e+00> : vector<128x128xf32>
    %8 = tpu.matmul %4, %7, %cst {dimension_numbers = #tpu.dot_dimension_numbers<[1], [1], [0], [0], [0, 0, 1, 0], [], []>} : vector<128x128xbf16>, vector<128x128xbf16>, vector<128x128xf32> -> vector<128x128xf32>
    %cst_4 = arith.constant 1.000000e+00 : f32
    %9 = vector.broadcast %cst_4 : f32 to vector<128x128xf32>
    %10 = arith.mulf %8, %9 : vector<128x128xf32>
    %c0_5 = arith.constant 0 : index
    %c0_6 = arith.constant 0 : index
    %11 = vector.load %arg2[%c0_5, %c0_6] : memref<128x128xbf16, #tpu.memory_space<vmem>>, vector<128x128xbf16>
    %cst_7 = arith.constant dense<0.000000e+00> : vector<128x128xf32>
    %12 = tpu.matmul %4, %11, %cst_7 {dimension_numbers = #tpu.dot_dimension_numbers<[1], [1], [0], [0], [0, 0, 1, 0], [], []>} : vector<128x128xbf16>, vector<128x128xbf16>, vector<128x128xf32> -> vector<128x128xf32>
    %cst_8 = arith.constant 1.000000e+00 : f32
    %13 = vector.broadcast %cst_8 : f32 to vector<128x128xf32>
    %14 = arith.mulf %12, %13 : vector<128x128xf32>
    %c0_9 = arith.constant 0 : index
    %c0_10 = arith.constant 0 : index
    %15 = vector.load %arg3[%c0_9, %c0_10] : memref<128x128xbf16, #tpu.memory_space<vmem>>, vector<128x128xbf16>
    %cst_11 = arith.constant dense<0.000000e+00> : vector<128x128xf32>
    %16 = tpu.matmul %6, %15, %cst_11 {dimension_numbers = #tpu.dot_dimension_numbers<[1], [1], [0], [0], [0, 0, 1, 0], [], []>} : vector<128x128xbf16>, vector<128x128xbf16>, vector<128x128xf32> -> vector<128x128xf32>
    %cst_12 = arith.constant 1.000000e+00 : f32
    %17 = vector.broadcast %cst_12 : f32 to vector<128x128xf32>
    %18 = arith.mulf %16, %17 : vector<128x128xf32>
    %c0_13 = arith.constant 0 : index
    %c0_14 = arith.constant 0 : index
    %19 = vector.load %arg2[%c0_13, %c0_14] : memref<128x128xbf16, #tpu.memory_space<vmem>>, vector<128x128xbf16>
    %cst_15 = arith.constant dense<0.000000e+00> : vector<128x128xf32>
    %20 = tpu.matmul %6, %19, %cst_15 {dimension_numbers = #tpu.dot_dimension_numbers<[1], [1], [0], [0], [0, 0, 1, 0], [], []>} : vector<128x128xbf16>, vector<128x128xbf16>, vector<128x128xf32> -> vector<128x128xf32>
    %cst_16 = arith.constant 1.000000e+00 : f32
    %21 = vector.broadcast %cst_16 : f32 to vector<128x128xf32>
    %22 = arith.mulf %20, %21 : vector<128x128xf32>
    %23 = arith.extf %4 : vector<128x128xbf16> to vector<128x128xf32>
    %24 = arith.extf %6 : vector<128x128xbf16> to vector<128x128xf32>
    %25 = arith.mulf %23, %24 : vector<128x128xf32>
    %cst_17 = arith.constant dense<0.000000e+00> : vector<128xf32>
    %26 = vector.multi_reduction <add>, %25, %cst_17 [1] : vector<128x128xf32> to vector<128xf32>
    %27 = vector.shape_cast %26 : vector<128xf32> to vector<128x1xf32>
    %cst_18 = arith.constant 1.000000e+00 : f32
    %28 = vector.broadcast %cst_18 : f32 to vector<128x1xf32>
    %29 = arith.mulf %27, %28 : vector<128x1xf32>
    %30 = tpu.iota {dimensions = array<i32: 0>} : vector<128x1xi32>
    %31 = vector.broadcast %2 : i32 to vector<128x1xi32>
    %32 = arith.addi %31, %30 : vector<128x1xi32>
    %33 = tpu.iota {dimensions = array<i32: 1>} : vector<1x128xi32>
    %34 = vector.broadcast %0 : i32 to vector<1x128xi32>
    %35 = arith.cmpi slt, %33, %34 : vector<1x128xi32>
    %36 = vector.broadcast %33 : vector<1x128xi32> to vector<128x128xi32>
    %37 = vector.broadcast %32 : vector<128x1xi32> to vector<128x128xi32>
    %38 = arith.cmpi ne, %36, %37 : vector<128x128xi32>
    %39 = vector.broadcast %35 : vector<1x128xi1> to vector<128x128xi1>
    %40 = arith.andi %39, %38 : vector<128x128xi1>
    %cst_19 = arith.constant dense<0xFF800000> : vector<128xf32>
    %41 = vector.multi_reduction <maximumf>, %10, %cst_19 [1] : vector<128x128xf32> to vector<128xf32>
    %42 = vector.shape_cast %41 : vector<128xf32> to vector<128x1xf32>
    %cst_20 = arith.constant dense<0xFF800000> : vector<128xf32>
    %43 = vector.multi_reduction <maximumf>, %14, %cst_20 [1] : vector<128x128xf32> to vector<128xf32>
    %44 = vector.shape_cast %43 : vector<128xf32> to vector<128x1xf32>
    %45 = arith.maximumf %42, %44 : vector<128x1xf32>
    %46 = vector.broadcast %45 : vector<128x1xf32> to vector<128x128xf32>
    %47 = arith.subf %10, %46 : vector<128x128xf32>
    %48 = math.exp %47 : vector<128x128xf32>
    %cst_21 = arith.constant 0.000000e+00 : f32
    %49 = vector.shape_cast %35 : vector<1x128xi1> to vector<1x128xi1>
    %50 = vector.broadcast %49 : vector<1x128xi1> to vector<128x128xi1>
    %51 = vector.broadcast %cst_21 : f32 to vector<128x128xf32>
    %52 = arith.select %50, %48, %51 : vector<128x128xi1>, vector<128x128xf32>
    %53 = vector.broadcast %45 : vector<128x1xf32> to vector<128x128xf32>
    %54 = arith.subf %14, %53 : vector<128x128xf32>
    %55 = math.exp %54 : vector<128x128xf32>
    %cst_22 = arith.constant 0.000000e+00 : f32
    %56 = vector.broadcast %cst_22 : f32 to vector<128x128xf32>
    %57 = arith.select %40, %55, %56 : vector<128x128xi1>, vector<128x128xf32>
    %cst_23 = arith.constant dense<0.000000e+00> : vector<128xf32>
    %58 = vector.multi_reduction <add>, %52, %cst_23 [1] : vector<128x128xf32> to vector<128xf32>
    %59 = vector.shape_cast %58 : vector<128xf32> to vector<128x1xf32>
    %cst_24 = arith.constant dense<0.000000e+00> : vector<128xf32>
    %60 = vector.multi_reduction <add>, %57, %cst_24 [1] : vector<128x128xf32> to vector<128xf32>
    %61 = vector.shape_cast %60 : vector<128xf32> to vector<128x1xf32>
    %62 = arith.addf %59, %61 : vector<128x1xf32>
    %63 = math.log %62 : vector<128x1xf32>
    %64 = arith.addf %45, %63 : vector<128x1xf32>
    %cst_25 = arith.constant dense<0xFF800000> : vector<128xf32>
    %65 = vector.multi_reduction <maximumf>, %18, %cst_25 [1] : vector<128x128xf32> to vector<128xf32>
    %66 = vector.shape_cast %65 : vector<128xf32> to vector<128x1xf32>
    %cst_26 = arith.constant dense<0xFF800000> : vector<128xf32>
    %67 = vector.multi_reduction <maximumf>, %22, %cst_26 [1] : vector<128x128xf32> to vector<128xf32>
    %68 = vector.shape_cast %67 : vector<128xf32> to vector<128x1xf32>
    %69 = arith.maximumf %66, %68 : vector<128x1xf32>
    %70 = vector.broadcast %69 : vector<128x1xf32> to vector<128x128xf32>
    %71 = arith.subf %18, %70 : vector<128x128xf32>
    %72 = math.exp %71 : vector<128x128xf32>
    %cst_27 = arith.constant 0.000000e+00 : f32
    %73 = vector.broadcast %cst_27 : f32 to vector<128x128xf32>
    %74 = arith.select %40, %72, %73 : vector<128x128xi1>, vector<128x128xf32>
    %75 = vector.broadcast %69 : vector<128x1xf32> to vector<128x128xf32>
    %76 = arith.subf %22, %75 : vector<128x128xf32>
    %77 = math.exp %76 : vector<128x128xf32>
    %cst_28 = arith.constant 0.000000e+00 : f32
    %78 = vector.shape_cast %35 : vector<1x128xi1> to vector<1x128xi1>
    %79 = vector.broadcast %78 : vector<1x128xi1> to vector<128x128xi1>
    %80 = vector.broadcast %cst_28 : f32 to vector<128x128xf32>
    %81 = arith.select %79, %77, %80 : vector<128x128xi1>, vector<128x128xf32>
    %cst_29 = arith.constant dense<0.000000e+00> : vector<128xf32>
    %82 = vector.multi_reduction <add>, %74, %cst_29 [1] : vector<128x128xf32> to vector<128xf32>
    %83 = vector.shape_cast %82 : vector<128xf32> to vector<128x1xf32>
    %cst_30 = arith.constant dense<0.000000e+00> : vector<128xf32>
    %84 = vector.multi_reduction <add>, %81, %cst_30 [1] : vector<128x128xf32> to vector<128xf32>
    %85 = vector.shape_cast %84 : vector<128xf32> to vector<128x1xf32>
    %86 = arith.addf %83, %85 : vector<128x1xf32>
    %87 = math.log %86 : vector<128x1xf32>
    %88 = arith.addf %69, %87 : vector<128x1xf32>
    %89 = vector.broadcast %0 : i32 to vector<128x1xi32>
    %90 = arith.cmpi slt, %32, %89 : vector<128x1xi32>
    %91 = arith.subf %64, %29 : vector<128x1xf32>
    %92 = arith.subf %88, %29 : vector<128x1xf32>
    %93 = arith.addf %91, %92 : vector<128x1xf32>
    %cst_31 = arith.constant 0.000000e+00 : f32
    %94 = vector.broadcast %cst_31 : f32 to vector<128x1xf32>
    %95 = arith.select %90, %93, %94 : vector<128x1xi1>, vector<128x1xf32>
    %c0_32 = arith.constant 0 : index
    %c0_33 = arith.constant 0 : index
    %96 = vector.load %arg4[%c0_32, %c0_33] : memref<128x1xf32, #tpu.memory_space<vmem>>, vector<128x1xf32>
    tpu.vector_store %arg4[%c0_32, %c0_33], %95 {strides = array<i32>} : memref<128x1xf32, #tpu.memory_space<vmem>>, vector<128x1xf32>,
    return
  }
  func.func @transform_0(%arg0: i32, %arg1: memref<1xi32, #tpu.memory_space<smem>>) -> (i32, i32) {
    %c0_i32 = arith.constant 0 : i32
    %c0_i32_0 = arith.constant 0 : i32
    %c0_i32_1 = arith.constant 0 : i32
    return %c0_i32, %c0_i32_0 : i32, i32
  }
  func.func @transform_1(%arg0: i32, %arg1: memref<1xi32, #tpu.memory_space<smem>>) -> (i32, i32) {
    %c0_i32 = arith.constant 0 : i32
    %c0_i32_0 = arith.constant 0 : i32
    %c0_i32_1 = arith.constant 0 : i32
    return %c0_i32, %c0_i32_0 : i32, i32
  }
  func.func @transform_2(%arg0: i32, %arg1: memref<1xi32, #tpu.memory_space<smem>>) -> (i32, i32) {
    %c0_i32 = arith.constant 0 : i32
    %c0_i32_0 = arith.constant 0 : i32
    return %arg0, %c0_i32 : i32, i32
  }
}

</mosaic_0001>

<bundles_post_ra>
// kernel: _forward_impl.2
= control target key start
LH: loop header
LB: loop body
LE: loop exit
PB: predicated region body
PF: predicated region fallthrough
CT: control target
= control target key end

     0   :  { %s583_s1 = inlined_call_operand.vmem [shape: bf16[128,128], index: 1, kind: input, shape index: {}]   ;;  %s584_s0 = inlined_call_operand.vmem [shape: bf16[128,128], index: 0, kind: input, shape index: {}]   ;;  %s585_s2 = inlined_call_operand.vmem [shape: bf16[128,128], index: 2, kind: output, shape index: {}]  }
   0x1   :  { %v480_v0 = vld [vmem:[%s583_s1] sm:$0xff]   ;;  %v481_v1 = vld [vmem:[%s583_s1 + $0x8] sm:$0xff]   ;;  %v482_v2 = vld [vmem:[%s583_s1 + $0x10] sm:$0xff]  }
   0x2   :  { %432 = vmatprep.subr.bf16.mxu0 %v480_v0  ;;  %464 = vmatprep.subr.bf16.mxu1 %v480_v0  ;;  %v483_v3 = vld [vmem:[%s583_s1 + $0x18] sm:$0xff]   ;;  %v488_v4 = vld [vmem:[%s584_s0] sm:$0xff]   ;;  %v485_v7 = vld [vmem:[%s583_s1 + $0x28] sm:$0xff]  }
   0x3   :  { %433 = vmatpush3.bf16.msra.mxu0 %v480_v0  ;;  %472 = vmatpush3.bf16.msra.mxu1 %v480_v0  ;;  %v489_v5 = vld [vmem:[%s584_s0 + $0x20] sm:$0xff]   ;;  %v486_v8 = vld [vmem:[%s583_s1 + $0x30] sm:$0xff]   ;;  %v487_v9 = vld [vmem:[%s583_s1 + $0x38] sm:$0xff]  }
   0x4   :  { %434 = vmatprep.subr.bf16.mxu0 %v481_v1  ;;  %465 = vmatprep.subr.bf16.mxu1 %v481_v1  ;;  %v484_v6 = vld [vmem:[%s583_s1 + $0x20] sm:$0xff]   ;;  %v490_v10 = vld [vmem:[%s584_s0 + $0x8] sm:$0xff]   ;;  %v492_v12 = vld [vmem:[%s584_s0 + $0x10] sm:$0xff]  }
   0x5   :  { %448 = vmatprep.mubr.bf16.mxu0 %v488_v4  ;;  %456 = vmatprep.mubr.bf16.mxu1 %v489_v5  ;;  %v491_v11 = vld [vmem:[%s584_s0 + $0x28] sm:$0xff]   ;;  %v493_v13 = vld [vmem:[%s584_s0 + $0x30] sm:$0xff]   ;;  %v494_v14 = vld [vmem:[%s584_s0 + $0x18] sm:$0xff]  }
   0x6   :  { %v495_v15 = vld [vmem:[%s584_s0 + $0x38] sm:$0xff]  }
   0x7   :  { %435 = vmatpush3.bf16.msra.mxu0 %v481_v1  ;;  %473 = vmatpush3.bf16.msra.mxu1 %v481_v1 }
   0x8   :  { %436 = vmatprep.subr.bf16.mxu0 %v482_v2  ;;  %466 = vmatprep.subr.bf16.mxu1 %v482_v2 }
   0xb   :  { %437 = vmatpush3.bf16.msra.mxu0 %v482_v2  ;;  %474 = vmatpush3.bf16.msra.mxu1 %v482_v2 }
   0xc   :  { %438 = vmatprep.subr.bf16.mxu0 %v483_v3  ;;  %467 = vmatprep.subr.bf16.mxu1 %v483_v3 }
   0xf   :  { %439 = vmatpush3.bf16.msra.mxu0 %v483_v3  ;;  %475 = vmatpush3.bf16.msra.mxu1 %v483_v3 }
  0x10   :  { %440 = vmatprep.subr.bf16.mxu0 %v484_v6  ;;  %468 = vmatprep.subr.bf16.mxu1 %v484_v6 }
  0x13   :  { %441 = vmatpush3.bf16.msra.mxu0 %v484_v6  ;;  %476 = vmatpush3.bf16.msra.mxu1 %v484_v6 }
  0x14   :  { %442 = vmatprep.subr.bf16.mxu0 %v485_v7  ;;  %469 = vmatprep.subr.bf16.mxu1 %v485_v7 }
  0x17   :  { %443 = vmatpush3.bf16.msra.mxu0 %v485_v7  ;;  %477 = vmatpush3.bf16.msra.mxu1 %v485_v7 }
  0x18   :  { %444 = vmatprep.subr.bf16.mxu0 %v486_v8  ;;  %470 = vmatprep.subr.bf16.mxu1 %v486_v8 }
  0x1b   :  { %445 = vmatpush3.bf16.msra.mxu0 %v486_v8  ;;  %478 = vmatpush3.bf16.msra.mxu1 %v486_v8 }
  0x1c   :  { %446 = vmatprep.subr.bf16.mxu0 %v487_v9  ;;  %471 = vmatprep.subr.bf16.mxu1 %v487_v9 }
  0x1f   :  { %447 = vmatpush3.bf16.msra.mxu0 %v487_v9  ;;  %479 = vmatpush3.bf16.msra.mxu1 %v487_v9 }
  0x22   :  { %449 = vmatmul.mubr.bf16.vlgmr.msra.gmra.mrb[0].mxu0 %v490_v10  ;;  %457 = vmatmul.mubr.bf16.vlgmr.msra.gmra.mrb[0].mxu1 %v491_v11 }
  0x23   :  { %452 = vmatprep.mubr.bf16.mxu0 %v492_v12  ;;  %460 = vmatprep.mubr.bf16.mxu1 %v493_v13 }
  0x2a   :  { %453 = vmatmul.mubr.bf16.gmra.mrb[4].mxu0 %v494_v14  ;;  %461 = vmatmul.mubr.bf16.gmra.mrb[4].mxu1 %v495_v15 }
  0xf5   :  { %v450_v16 = vpop.f32.mrb[0].mxu0  ;;  %v458_v17 = vpop.f32.mrb[0].mxu1 }
  0xf6   :  { %v174_v18 = vpop.f32.mrb[1].mxu0  ;;  %v206_v19 = vpop.f32.mrb[1].mxu1 }
  0xf7   :  { %v451_v20 = vpop.f32.mrb[2].mxu0  ;;  %v459_v21 = vpop.f32.mrb[2].mxu1 }
  0xf8   :  { %v377_v22 = vpack.c.bf16 %v451_v20, %v450_v16  ;;  %v397_v23 = vpack.c.bf16 %v459_v21, %v458_v17  ;;  %v177_v24 = vpop.f32.mrb[3].mxu0  ;;  %v209_v25 = vpop.f32.mrb[3].mxu1 }
  0xf9   :  { %v372_v26 = vpack.c.bf16 %v177_v24, %v174_v18  ;;  %v392_v27 = vpack.c.bf16 %v209_v25, %v206_v19 }
  0xfa   :  { %409 = vst [vmem:[%s585_s2 + $0x8] sm:$0xff] %v377_v22   ;;  %413 = vst [vmem:[%s585_s2 + $0x28] sm:$0xff] %v397_v23  }
  0xfb   :  { %373 = vst [vmem:[%s585_s2] sm:$0xff] %v372_v26   ;;  %412 = vst [vmem:[%s585_s2 + $0x20] sm:$0xff] %v392_v27  }
  0xfd   :  { %v454_v28 = vpop.f32.mrb[4].mxu0  ;;  %v462_v29 = vpop.f32.mrb[4].mxu1 }
  0xfe   :  { %v190_v30 = vpop.f32.mrb[5].mxu0  ;;  %v222_v31 = vpop.f32.mrb[5].mxu1 }
  0xff   :  { %v455_v32 = vpop.f32.mrb[6].mxu0  ;;  %v463_v33 = vpop.f32.mrb[6].mxu1 }
 0x100   :  { %v387_v34 = vpack.c.bf16 %v455_v32, %v454_v28  ;;  %v407_v35 = vpack.c.bf16 %v463_v33, %v462_v29  ;;  %v193_v36 = vpop.f32.mrb[7].mxu0  ;;  %v225_v37 = vpop.f32.mrb[7].mxu1 }
 0x101   :  { %v382_v38 = vpack.c.bf16 %v193_v36, %v190_v30  ;;  %v402_v39 = vpack.c.bf16 %v225_v37, %v222_v31 }
 0x102   :  { %411 = vst [vmem:[%s585_s2 + $0x18] sm:$0xff] %v387_v34   ;;  %415 = vst [vmem:[%s585_s2 + $0x38] sm:$0xff] %v407_v35  }
 0x103   :  { %410 = vst [vmem:[%s585_s2 + $0x10] sm:$0xff] %v382_v38   ;;  %414 = vst [vmem:[%s585_s2 + $0x30] sm:$0xff] %v402_v39  }

// kernel: _forward_impl.3
= control target key start
LH: loop header
LB: loop body
LE: loop exit
PB: predicated region body
PF: predicated region fallthrough
CT: control target
= control target key end

     0   :  { %s3319_s2 = inlined_call_operand.vmem [shape: bf16[128,128], index: 2, kind: input, shape index: {}]   ;;  %s3320_s1 = inlined_call_operand.vmem [shape: bf16[128,128], index: 1, kind: input, shape index: {}]   ;;  %s3321_s0 = inlined_call_operand.<no memory space> [shape: s32[1], index: 0, kind: input, shape index: {}]   ;;  %s3322_s3 = inlined_call_operand.vmem [shape: f32[128,1], index: 3, kind: output, shape index: {}]  }
   0x1   :  { %v2082_v0 = vld [vmem:[%s3319_s2] sm:$0xff]   ;;  %v2093_v2 = vld [vmem:[%s3319_s2 + $0x8] sm:$0xff]   ;;  %v2108_v4 = vld [vmem:[%s3319_s2 + $0x10] sm:$0xff]  }
   0x2   :  { %v2087_v1 = vld [vmem:[%s3320_s1] sm:$0xff]   ;;  %1691 = vmatprep.subr.bf16.mxu0 %v2082_v0  ;;  %v2100_v3 = vld [vmem:[%s3320_s1 + $0x8] sm:$0xff]   ;;  %v2113_v5 = vld [vmem:[%s3320_s1 + $0x10] sm:$0xff]  }
   0x3   :  { %1692 = vmatpush3.bf16.xpose.msra.mxu0 %v2082_v0  ;;  %1723 = vmatprep.subr.bf16.mxu1 %v2087_v1  ;;  %v2122_v6 = vld [vmem:[%s3319_s2 + $0x18] sm:$0xff]   ;;  %v20_v7 = vld [vmem:[%s3320_s1] sm:$0xff]   ;;  %v2149_v11 = vld [vmem:[%s3320_s1 + $0x8] sm:$0xff]  }
   0x4   :  { %1724 = vmatpush3.bf16.xpose.msra.mxu1 %v2087_v1  ;;  %1693 = vmatprep.subr.bf16.mxu0 %v2093_v2  ;;  %v2130_v8 = vld [vmem:[%s3320_s1 + $0x18] sm:$0xff]   ;;  %v2139_v9 = vld [vmem:[%s3319_s2 + $0x20] sm:$0xff]   ;;  %v2159_v13 = vld [vmem:[%s3319_s2 + $0x8] sm:$0xff]   ;;  %v666_v14 = vunpack.c.l.bf16 %v20_v7  ;;  %v668_v16 = vunpack.c.l.bf16 %v2149_v11  ;;  %v667_v18 = vunpack.c.h.bf16 %v20_v7  ;;  %v669_v22 = vunpack.c.h.bf16 %v2149_v11 }
   0x5   :  { %1725 = vmatprep.subr.bf16.mxu1 %v2100_v3  ;;  %1707 = vmatprep.mubr.bf16.mxu0 %v20_v7  ;;  %v2144_v10 = vld [vmem:[%s3320_s1 + $0x20] sm:$0xff]   ;;  %v684_v17 = vunpack.c.l.bf16 %v2159_v13  ;;  %v685_v23 = vunpack.c.h.bf16 %v2159_v13  ;;  %v2174_v24 = vld [vmem:[%s3320_s1 + $0x10] sm:$0xff]   ;;  %v2186_v29 = vld [vmem:[%s3319_s2 + $0x28] sm:$0xff]  }
   0x6   :  { %1739 = vmatprep.mubr.bf16.mxu1 %v20_v7  ;;  %v2154_v12 = vld [vmem:[%s3319_s2] sm:$0xff]   ;;  %v2179_v25 = vld [vmem:[%s3319_s2 + $0x10] sm:$0xff]   ;;  %v670_v27 = vunpack.c.l.bf16 %v2174_v24  ;;  %v2191_v30 = vld [vmem:[%s3320_s1 + $0x28] sm:$0xff]   ;;  %v671_v32 = vunpack.c.h.bf16 %v2174_v24 }
   0x7   :  { %v682_v15 = vunpack.c.l.bf16 %v2154_v12  ;;  %v683_v19 = vunpack.c.h.bf16 %v2154_v12  ;;  %v700_v21 = vmul.f32 %v684_v17, %v668_v16  ;;  %v686_v28 = vunpack.c.l.bf16 %v2179_v25  ;;  %v2198_v34 = vld [vmem:[%s3320_s1 + $0x18] sm:$0xff]   ;;  %v2216_v42 = vld [vmem:[%s3320_s1 + $0x20] sm:$0xff]   ;;  %v2228_v47 = vld [vmem:[%s3319_s2 + $0x30] sm:$0xff]  }
   0x8   :  { %v701_v31 = vmul.f32 %v685_v23, %v669_v22  ;;  %v687_v33 = vunpack.c.h.bf16 %v2179_v25  ;;  %v2203_v35 = vld [vmem:[%s3319_s2 + $0x18] sm:$0xff]   ;;  %v672_v37 = vunpack.c.l.bf16 %v2198_v34  ;;  %v673_v40 = vunpack.c.h.bf16 %v2198_v34  ;;  %v2221_v43 = vld [vmem:[%s3319_s2 + $0x20] sm:$0xff]   ;;  %v2233_v48 = vld [vmem:[%s3320_s1 + $0x30] sm:$0xff]  }
   0x9   :  { %v698_v20 = vmul.f32 %v682_v15, %v666_v14  ;;  %718 = vadd.xlane.f32.xlu1 %v700_v21  ;;  %v699_v26 = vmul.f32 %v683_v19, %v667_v18  ;;  %v702_v36 = vmul.f32 %v686_v28, %v670_v27  ;;  %v688_v38 = vunpack.c.l.bf16 %v2203_v35  ;;  %v2240_v52 = vld [vmem:[%s3320_s1 + $0x28] sm:$0xff]   ;;  %v32_v60 = vld [vmem:[%s3320_s1 + $0x30] sm:$0xff]   ;;  %v2267_v14 = vld [vmem:[%s3319_s2 + $0x38] sm:$0xff]  }
   0xa   :  { %v703_v39 = vmul.f32 %v687_v33, %v671_v32  ;;  %v689_v41 = vunpack.c.h.bf16 %v2203_v35  ;;  %v674_v45 = vunpack.c.l.bf16 %v2216_v42  ;;  %v690_v46 = vunpack.c.l.bf16 %v2221_v43  ;;  %v2245_v53 = vld [vmem:[%s3319_s2 + $0x28] sm:$0xff]   ;;  %v2261_v61 = vld [vmem:[%s3319_s2 + $0x30] sm:$0xff]   ;;  %v2272_v15 = vld [vmem:[%s3320_s1 + $0x38] sm:$0xff]  }
   0xb   :  { %1694 = vmatpush3.bf16.xpose.msra.mxu0 %v2093_v2  ;;  %714 = vadd.xlane.f32.xlu0 %v698_v20  ;;  %v704_v44 = vmul.f32 %v688_v38, %v672_v37  ;;  %v675_v50 = vunpack.c.h.bf16 %v2216_v42  ;;  %v691_v51 = vunpack.c.h.bf16 %v2221_v43  ;;  %v676_v55 = vunpack.c.l.bf16 %v2240_v52  ;;  %v34_v19 = vld [vmem:[%s3320_s1 + $0x38] sm:$0xff]  }
   0xc   :  { %1726 = vmatpush3.bf16.xpose.msra.mxu1 %v2100_v3  ;;  %1695 = vmatprep.subr.bf16.mxu0 %v2108_v4  ;;  %v705_v49 = vmul.f32 %v689_v41, %v673_v40  ;;  %v706_v54 = vmul.f32 %v690_v46, %v674_v45  ;;  %v692_v56 = vunpack.c.l.bf16 %v2245_v53  ;;  %v677_v58 = vunpack.c.h.bf16 %v2240_v52  ;;  %v2281_v20 = vld [vmem:[%s3319_s2 + $0x38] sm:$0xff]  }
   0xd   :  { %1727 = vmatprep.subr.bf16.mxu1 %v2113_v5  ;;  %720 = vadd.xlane.f32.xlu1 %v701_v31  ;;  %v707_v57 = vmul.f32 %v691_v51, %v675_v50  ;;  %v693_v59 = vunpack.c.h.bf16 %v2245_v53  ;;  %v678_v63 = vunpack.c.l.bf16 %v32_v60  ;;  %v694_v7 = vunpack.c.l.bf16 %v2261_v61 }
   0xe   :  { %v708_v62 = vmul.f32 %v692_v56, %v676_v55  ;;  %v679_v17 = vunpack.c.h.bf16 %v32_v60  ;;  %v695_v18 = vunpack.c.h.bf16 %v2261_v61  ;;  %v680_v22 = vunpack.c.l.bf16 %v34_v19 }
   0xf   :  { %716 = vadd.xlane.f32.xlu0 %v699_v26  ;;  %v709_v16 = vmul.f32 %v693_v59, %v677_v58  ;;  %v710_v21 = vmul.f32 %v694_v7, %v678_v63  ;;  %v696_v23 = vunpack.c.l.bf16 %v2281_v20  ;;  %v681_v27 = vunpack.c.h.bf16 %v34_v19 }
  0x10   :  { %v711_v26 = vmul.f32 %v695_v18, %v679_v17  ;;  %v697_v28 = vunpack.c.h.bf16 %v2281_v20 }
  0x11   :  { %724 = vadd.xlane.f32.xlu1 %v703_v39  ;;  %v712_v31 = vmul.f32 %v696_v23, %v680_v22 }
  0x12   :  { %v713_v32 = vmul.f32 %v697_v28, %v681_v27 }
  0x13   :  { %1696 = vmatpush3.bf16.xpose.msra.mxu0 %v2108_v4  ;;  %722 = vadd.xlane.f32.xlu0 %v702_v36 }
  0x14   :  { %1728 = vmatpush3.bf16.xpose.msra.mxu1 %v2113_v5  ;;  %1697 = vmatprep.subr.bf16.mxu0 %v2122_v6 }
  0x15   :  { %1729 = vmatprep.subr.bf16.mxu1 %v2130_v8  ;;  %728 = vadd.xlane.f32.xlu1 %v705_v49 }
  0x17   :  { %726 = vadd.xlane.f32.xlu0 %v704_v44 }
  0x19   :  { %732 = vadd.xlane.f32.xlu1 %v707_v57 }
  0x1b   :  { %1698 = vmatpush3.bf16.xpose.msra.mxu0 %v2122_v6  ;;  %730 = vadd.xlane.f32.xlu0 %v706_v54 }
  0x1c   :  { %1730 = vmatpush3.bf16.xpose.msra.mxu1 %v2130_v8  ;;  %1699 = vmatprep.subr.bf16.mxu0 %v2139_v9 }
  0x1d   :  { %1731 = vmatprep.subr.bf16.mxu1 %v2144_v10  ;;  %736 = vadd.xlane.f32.xlu1 %v709_v16 }
  0x1f   :  { %734 = vadd.xlane.f32.xlu0 %v708_v62 }
  0x21   :  { %740 = vadd.xlane.f32.xlu1 %v711_v26 }
  0x23   :  { %1700 = vmatpush3.bf16.xpose.msra.mxu0 %v2139_v9  ;;  %738 = vadd.xlane.f32.xlu0 %v710_v21 }
  0x24   :  { %1732 = vmatpush3.bf16.xpose.msra.mxu1 %v2144_v10  ;;  %1701 = vmatprep.subr.bf16.mxu0 %v2186_v29 }
  0x25   :  { %1733 = vmatprep.subr.bf16.mxu1 %v2191_v30  ;;  %744 = vadd.xlane.f32.xlu1 %v713_v32 }
  0x27   :  { %742 = vadd.xlane.f32.xlu0 %v712_v31 }
  0x2b   :  { %1702 = vmatpush3.bf16.xpose.msra.mxu0 %v2186_v29 }
  0x2c   :  { %1734 = vmatpush3.bf16.xpose.msra.mxu1 %v2191_v30  ;;  %1703 = vmatprep.subr.bf16.mxu0 %v2228_v47 }
  0x2d   :  { %1735 = vmatprep.subr.bf16.mxu1 %v2233_v48 }
  0x33   :  { %1704 = vmatpush3.bf16.xpose.msra.mxu0 %v2228_v47 }
  0x34   :  { %1736 = vmatpush3.bf16.xpose.msra.mxu1 %v2233_v48  ;;  %1705 = vmatprep.subr.bf16.mxu0 %v2267_v14 }
  0x35   :  { %1737 = vmatprep.subr.bf16.mxu1 %v2272_v15 }
  0x3b   :  { %1706 = vmatpush3.bf16.xpose.msra.mxu0 %v2267_v14 }
  0x3c   :  { %1738 = vmatpush3.bf16.xpose.msra.mxu1 %v2272_v15  ;;  %1755 = vmatprep.subr.bf16.mxu0 %v2082_v0 }
  0x3d   :  { %1787 = vmatprep.subr.bf16.mxu1 %v2087_v1 }
  0x42   :  { %1708 = vmatmul.mubr.bf16.vlgmr.msra.gmra.mrb[0].mxu0 %v2149_v11 }
  0x43   :  { %1740 = vmatmul.mubr.bf16.vlgmr.msra.gmra.mrb[0].mxu1 %v2149_v11  ;;  %1756 = vmatpush3.bf16.xpose.msra.mxu0 %v2082_v0 }
  0x44   :  { %1788 = vmatpush3.bf16.xpose.msra.mxu1 %v2087_v1  ;;  %1757 = vmatprep.subr.bf16.mxu0 %v2093_v2 }
  0x45   :  { %1789 = vmatprep.subr.bf16.mxu1 %v2100_v3  ;;  %1711 = vmatprep.mubr.bf16.mxu0 %v2174_v24 }
  0x46   :  { %1743 = vmatprep.mubr.bf16.mxu1 %v2174_v24 }
  0x4a   :  { %1712 = vmatmul.mubr.bf16.gmra.mrb[4].mxu0 %v2198_v34 }
  0x4b   :  { %1758 = vmatpush3.bf16.xpose.msra.mxu0 %v2093_v2  ;;  %1744 = vmatmul.mubr.bf16.gmra.mrb[4].mxu1 %v2198_v34 }
  0x4c   :  { %1790 = vmatpush3.bf16.xpose.msra.mxu1 %v2100_v3  ;;  %1759 = vmatprep.subr.bf16.mxu0 %v2108_v4 }
  0x4d   :  { %1791 = vmatprep.subr.bf16.mxu1 %v2113_v5  ;;  %1715 = vmatprep.mubr.bf16.mxu0 %v2216_v42 }
  0x4e   :  { %1747 = vmatprep.mubr.bf16.mxu1 %v2216_v42 }
  0x52   :  { %1716 = vmatmul.mubr.bf16.gmra.mrb[8].mxu0 %v2240_v52 }
  0x53   :  { %1760 = vmatpush3.bf16.xpose.msra.mxu0 %v2108_v4  ;;  %1748 = vmatmul.mubr.bf16.gmra.mrb[8].mxu1 %v2240_v52 }
  0x54   :  { %1792 = vmatpush3.bf16.xpose.msra.mxu1 %v2113_v5  ;;  %1761 = vmatprep.subr.bf16.mxu0 %v2122_v6 }
  0x55   :  { %1793 = vmatprep.subr.bf16.mxu1 %v2130_v8  ;;  %1719 = vmatprep.mubr.bf16.mxu0 %v32_v60 }
  0x56   :  { %1751 = vmatprep.mubr.bf16.mxu1 %v32_v60 }
  0x5a   :  { %1720 = vmatmul.mubr.bf16.gmra.mrb[12].mxu0 %v34_v19 }
  0x5b   :  { %1762 = vmatpush3.bf16.xpose.msra.mxu0 %v2122_v6  ;;  %1752 = vmatmul.mubr.bf16.gmra.mrb[12].mxu1 %v34_v19 }
  0x5c   :  { %1794 = vmatpush3.bf16.xpose.msra.mxu1 %v2130_v8  ;;  %1763 = vmatprep.subr.bf16.mxu0 %v2139_v9 }
  0x5d   :  { %1795 = vmatprep.subr.bf16.mxu1 %v2144_v10  ;;  %1771 = vmatprep.mubr.bf16.mxu0 %v2154_v12 }
  0x5e   :  { %1803 = vmatprep.mubr.bf16.mxu1 %v2154_v12 }
  0x63   :  { %1764 = vmatpush3.bf16.xpose.msra.mxu0 %v2139_v9 }
  0x64   :  { %1796 = vmatpush3.bf16.xpose.msra.mxu1 %v2144_v10  ;;  %1765 = vmatprep.subr.bf16.mxu0 %v2186_v29 }
  0x65   :  { %1797 = vmatprep.subr.bf16.mxu1 %v2191_v30 }
  0x6b   :  { %1766 = vmatpush3.bf16.xpose.msra.mxu0 %v2186_v29 }
  0x6c   :  { %1798 = vmatpush3.bf16.xpose.msra.mxu1 %v2191_v30  ;;  %1767 = vmatprep.subr.bf16.mxu0 %v2228_v47 }
  0x6d   :  { %1799 = vmatprep.subr.bf16.mxu1 %v2233_v48 }
  0x73   :  { %1768 = vmatpush3.bf16.xpose.msra.mxu0 %v2228_v47 }
  0x74   :  { %1800 = vmatpush3.bf16.xpose.msra.mxu1 %v2233_v48  ;;  %1769 = vmatprep.subr.bf16.mxu0 %v2267_v14 }
  0x75   :  { %1801 = vmatprep.subr.bf16.mxu1 %v2272_v15 }
  0x7b   :  { %1770 = vmatpush3.bf16.xpose.msra.mxu0 %v2267_v14 }
  0x7c   :  { %1802 = vmatpush3.bf16.xpose.msra.mxu1 %v2272_v15 }
  0x82   :  { %1772 = vmatmul.mubr.bf16.vlgmr.msra.gmra.mrb[16].mxu0 %v2159_v13 }
  0x83   :  { %1804 = vmatmul.mubr.bf16.vlgmr.msra.gmra.mrb[16].mxu1 %v2159_v13  ;;  %1775 = vmatprep.mubr.bf16.mxu0 %v2179_v25 }
  0x84   :  { %1807 = vmatprep.mubr.bf16.mxu1 %v2179_v25 }
  0x8a   :  { %1776 = vmatmul.mubr.bf16.gmra.mrb[20].mxu0 %v2203_v35 }
  0x8b   :  { %1808 = vmatmul.mubr.bf16.gmra.mrb[20].mxu1 %v2203_v35  ;;  %1779 = vmatprep.mubr.bf16.mxu0 %v2221_v43 }
  0x8c   :  { %1811 = vmatprep.mubr.bf16.mxu1 %v2221_v43 }
  0x92   :  { %1780 = vmatmul.mubr.bf16.gmra.mrb[24].mxu0 %v2245_v53 }
  0x93   :  { %1812 = vmatmul.mubr.bf16.gmra.mrb[24].mxu1 %v2245_v53  ;;  %1783 = vmatprep.mubr.bf16.mxu0 %v2261_v61 }
  0x94   :  { %1815 = vmatprep.mubr.bf16.mxu1 %v2261_v61 }
  0x9a   :  { %1784 = vmatmul.mubr.bf16.gmra.mrb[28].mxu0 %v2281_v20 }
  0x9b   :  { %1816 = vmatmul.mubr.bf16.gmra.mrb[28].mxu1 %v2281_v20 }
 0x115   :  { %v2349_v0 = vpop.f32.mrb[0].mxu0 }
 0x116   :  { %v2351_v1 = vpop.f32.mrb[0].mxu1  ;;  %822 = vmax.xlane.f32.xlu0 %v2349_v0  ;;  %v2354_v2 = vpop.f32.mrb[1].mxu0 }
 0x117   :  { %v2356_v3 = vpop.f32.mrb[2].mxu0  ;;  %v2358_v4 = vpop.f32.mrb[1].mxu1 }
 0x118   :  { %v2360_v5 = vpop.f32.mrb[2].mxu1  ;;  %824 = vmax.xlane.f32.xlu1 %v2356_v3  ;;  %v2363_v6 = vpop.f32.mrb[3].mxu0 }
 0x119   :  { %v2365_v8 = vpop.f32.mrb[3].mxu1 }
 0x11a   :  { %854 = vmax.xlane.f32.xlu0 %v2351_v1 }
 0x11c   :  { %856 = vmax.xlane.f32.xlu1 %v2360_v5 }
 0x11d   :  { %v2369_v9 = vpop.f32.mrb[4].mxu0 }
 0x11e   :  { %818 = vmax.xlane.f32.xlu0 %v2354_v2  ;;  %v2372_v10 = vpop.f32.mrb[5].mxu0  ;;  %v2374_v11 = vpop.f32.mrb[4].mxu1 }
 0x11f   :  { %v2376_v12 = vpop.f32.mrb[6].mxu0  ;;  %v2378_v13 = vpop.f32.mrb[5].mxu1 }
 0x120   :  { %820 = vmax.xlane.f32.xlu1 %v2363_v6  ;;  %v2381_v24 = vpop.f32.mrb[7].mxu0  ;;  %v2383_v25 = vpop.f32.mrb[6].mxu1 }
 0x121   :  { %v2385_v29 = vpop.f32.mrb[7].mxu1 }
 0x122   :  { %850 = vmax.xlane.f32.xlu0 %v2358_v4 }
 0x124   :  { %852 = vmax.xlane.f32.xlu1 %v2365_v8 }
 0x125   :  { %v2389_v30 = vpop.f32.mrb[8].mxu0 }
 0x126   :  { %830 = vmax.xlane.f32.xlu0 %v2369_v9  ;;  %v2392_v33 = vpop.f32.mrb[9].mxu0  ;;  %v2394_v34 = vpop.f32.mrb[8].mxu1 }
 0x127   :  { %v2396_v35 = vpop.f32.mrb[10].mxu0  ;;  %v2398_v36 = vpop.f32.mrb[9].mxu1 }
 0x128   :  { %832 = vmax.xlane.f32.xlu1 %v2376_v12  ;;  %v2401_v37 = vpop.f32.mrb[11].mxu0  ;;  %v2403_v38 = vpop.f32.mrb[10].mxu1 }
 0x129   :  { %v2405_v39 = vpop.f32.mrb[11].mxu1 }
 0x12a   :  { %862 = vmax.xlane.f32.xlu0 %v2374_v11 }
 0x12c   :  { %864 = vmax.xlane.f32.xlu1 %v2383_v25 }
 0x12d   :  { %v2409_v40 = vpop.f32.mrb[12].mxu0 }
 0x12e   :  { %826 = vmax.xlane.f32.xlu0 %v2372_v10  ;;  %v2412_v41 = vpop.f32.mrb[13].mxu0  ;;  %v2414_v42 = vpop.f32.mrb[12].mxu1 }
 0x12f   :  { %v2416_v43 = vpop.f32.mrb[14].mxu0  ;;  %v2418_v44 = vpop.f32.mrb[13].mxu1 }
 0x130   :  { %828 = vmax.xlane.f32.xlu1 %v2381_v24  ;;  %v2421_v45 = vpop.f32.mrb[15].mxu0  ;;  %v2423_v46 = vpop.f32.mrb[14].mxu1 }
 0x131   :  { %v2425_v47 = vpop.f32.mrb[15].mxu1 }
 0x132   :  { %858 = vmax.xlane.f32.xlu0 %v2378_v13 }
 0x134   :  { %860 = vmax.xlane.f32.xlu1 %v2385_v29 }
 0x136   :  { %838 = vmax.xlane.f32.xlu0 %v2389_v30 }
 0x138   :  { %840 = vmax.xlane.f32.xlu1 %v2396_v35 }
 0x13a   :  { %870 = vmax.xlane.f32.xlu0 %v2394_v34 }
 0x13c   :  { %872 = vmax.xlane.f32.xlu1 %v2403_v38 }
 0x13e   :  { %834 = vmax.xlane.f32.xlu0 %v2392_v33 }
 0x140   :  { %836 = vmax.xlane.f32.xlu1 %v2401_v37 }
 0x142   :  { %866 = vmax.xlane.f32.xlu0 %v2398_v36 }
 0x144   :  { %868 = vmax.xlane.f32.xlu1 %v2405_v39 }
 0x146   :  { %846 = vmax.xlane.f32.xlu0 %v2409_v40 }
 0x148   :  { %848 = vmax.xlane.f32.xlu1 %v2416_v43 }
 0x14a   :  { %878 = vmax.xlane.f32.xlu0 %v2414_v42 }
 0x14c   :  { %880 = vmax.xlane.f32.xlu1 %v2423_v46 }
 0x14e   :  { %842 = vmax.xlane.f32.xlu0 %v2412_v41 }
 0x150   :  { %844 = vmax.xlane.f32.xlu1 %v2421_v45 }
 0x152   :  { %874 = vmax.xlane.f32.xlu0 %v2418_v44 }
 0x154   :  { %876 = vmax.xlane.f32.xlu1 %v2425_v47 }
 0x155   :  { %v2445_v48 = vpop.f32.mrb[16].mxu0 }
 0x156   :  { %v2447_v49 = vpop.f32.mrb[16].mxu1  ;;  %1158 = vmax.xlane.f32.xlu0 %v2445_v48  ;;  %v2450_v50 = vpop.f32.mrb[17].mxu0 }
 0x157   :  { %v2452_v51 = vpop.f32.mrb[18].mxu0  ;;  %v2454_v52 = vpop.f32.mrb[17].mxu1 }
 0x158   :  { %v2456_v53 = vpop.f32.mrb[18].mxu1  ;;  %1160 = vmax.xlane.f32.xlu1 %v2452_v51  ;;  %v2459_v54 = vpop.f32.mrb[19].mxu0 }
 0x159   :  { %v2461_v55 = vpop.f32.mrb[19].mxu1 }
 0x15a   :  { %1190 = vmax.xlane.f32.xlu0 %v2447_v49 }
 0x15c   :  { %1192 = vmax.xlane.f32.xlu1 %v2456_v53 }
 0x15d   :  { %v2465_v56 = vpop.f32.mrb[20].mxu0 }
 0x15e   :  { %1154 = vmax.xlane.f32.xlu0 %v2450_v50  ;;  %v2468_v57 = vpop.f32.mrb[21].mxu0  ;;  %v2470_v58 = vpop.f32.mrb[20].mxu1 }
 0x15f   :  { %3373 = vst [vmem:[#allocation4_spill] sm:$0xff] %v2468_v57  ;;  %v2472_v59 = vpop.f32.mrb[22].mxu0  ;;  %v2474_v60 = vpop.f32.mrb[21].mxu1 }
 0x160   :  { %3374 = vst [vmem:[#allocation5_spill] sm:$0xff] %v2472_v59  ;;  %3375 = vst [vmem:[#allocation6_spill] sm:$0xff] %v2474_v60  ;;  %1156 = vmax.xlane.f32.xlu1 %v2459_v54  ;;  %v2477_v61 = vpop.f32.mrb[23].mxu0  ;;  %v2479_v62 = vpop.f32.mrb[22].mxu1 }
 0x161   :  { %3376 = vst [vmem:[#allocation7_spill] sm:$0xff] %v2477_v61  ;;  %3377 = vst [vmem:[#allocation8_spill] sm:$0xff] %v2479_v62  ;;  %v2481_v63 = vpop.f32.mrb[23].mxu1 }
 0x162   :  { %1186 = vmax.xlane.f32.xlu0 %v2454_v52 }
 0x164   :  { %1188 = vmax.xlane.f32.xlu1 %v2461_v55 }
 0x165   :  { %v2485_v7 = vpop.f32.mrb[24].mxu0 }
 0x166   :  { %1166 = vmax.xlane.f32.xlu0 %v2465_v56  ;;  %v2488_v14 = vpop.f32.mrb[25].mxu0  ;;  %v2490_v15 = vpop.f32.mrb[24].mxu1 }
 0x167   :  { %v2492_v16 = vpop.f32.mrb[26].mxu0  ;;  %v2494_v17 = vpop.f32.mrb[25].mxu1 }
 0x168   :  { %3378 = vst [vmem:[#allocation9_spill] sm:$0xff] %v2494_v17  ;;  %1168 = vmax.xlane.f32.xlu1 %v2472_v59  ;;  %v2497_v18 = vpop.f32.mrb[27].mxu0  ;;  %v2499_v19 = vpop.f32.mrb[26].mxu1 }
 0x169   :  { %3379 = vst [vmem:[#allocation10_spill] sm:$0xff] %v2497_v18  ;;  %v2501_v20 = vpop.f32.mrb[27].mxu1 }
 0x16a   :  { %3380 = vst [vmem:[#allocation11_spill] sm:$0xff] %v2501_v20  ;;  %1198 = vmax.xlane.f32.xlu0 %v2470_v58 }
 0x16c   :  { %1200 = vmax.xlane.f32.xlu1 %v2479_v62  ;;  %v2524_v62 = vpop.xlane.xlu0 %714 }
 0x16d   :  { %v2505_v21 = vpop.f32.mrb[28].mxu0  ;;  %3389 = vst [vmem:[#allocation20_spill] sm:$0xff] %v2524_v62 }
 0x16e   :  { %3381 = vst [vmem:[#allocation12_spill] sm:$0xff] %v2505_v21  ;;  %1162 = vmax.xlane.f32.xlu0 %v2468_v57  ;;  %v2508_v22 = vpop.f32.mrb[29].mxu0  ;;  %v2510_v23 = vpop.f32.mrb[28].mxu1 }
 0x16f   :  { %3382 = vst [vmem:[#allocation13_spill] sm:$0xff] %v2508_v22  ;;  %3383 = vst [vmem:[#allocation14_spill] sm:$0xff] %v2510_v23  ;;  %v2512_v26 = vpop.f32.mrb[30].mxu0  ;;  %v2514_v27 = vpop.f32.mrb[29].mxu1 }
 0x170   :  { %3384 = vst [vmem:[#allocation15_spill] sm:$0xff] %v2512_v26  ;;  %3385 = vst [vmem:[#allocation16_spill] sm:$0xff] %v2514_v27  ;;  %1164 = vmax.xlane.f32.xlu1 %v2477_v61  ;;  %v2517_v28 = vpop.f32.mrb[31].mxu0  ;;  %v2519_v31 = vpop.f32.mrb[30].mxu1 }
 0x171   :  { %3386 = vst [vmem:[#allocation17_spill] sm:$0xff] %v2517_v28  ;;  %3387 = vst [vmem:[#allocation18_spill] sm:$0xff] %v2519_v31  ;;  %v2521_v32 = vpop.f32.mrb[31].mxu1  ;;  %v2527_v57 = vpop.xlane.xlu1 %718 }
 0x172   :  { %3388 = vst [vmem:[#allocation19_spill] sm:$0xff] %v2521_v32  ;;  %1194 = vmax.xlane.f32.xlu0 %v2474_v60  ;;  %3390 = vst [vmem:[#allocation21_spill] sm:$0xff] %v2527_v57  ;;  %v2531_v59 = vpop.xlane.xlu0 %716 }
 0x173   :  { %3391 = vst [vmem:[#allocation22_spill] sm:$0xff] %v2531_v59 }
 0x174   :  { %1196 = vmax.xlane.f32.xlu1 %v2481_v63 }
 0x175   :  { %v2534_v61 = vpop.xlane.xlu1 %720 }
 0x176   :  { %1174 = vmax.xlane.f32.xlu0 %v2485_v7  ;;  %3392 = vst [vmem:[#allocation23_spill] sm:$0xff] %v2534_v61  ;;  %v2538_v60 = vpop.xlane.xlu0 %722 }
 0x177   :  { %3393 = vst [vmem:[#allocation24_spill] sm:$0xff] %v2538_v60 }
 0x178   :  { %1176 = vmax.xlane.f32.xlu1 %v2492_v16 }
 0x179   :  { %v2541_v62 = vpop.xlane.xlu1 %724 }
 0x17a   :  { %1206 = vmax.xlane.f32.xlu0 %v2490_v15  ;;  %3394 = vst [vmem:[#allocation25_spill] sm:$0xff] %v2541_v62  ;;  %v2545_v57 = vpop.xlane.xlu0 %726 }
 0x17b   :  { %3395 = vst [vmem:[#allocation26_spill] sm:$0xff] %v2545_v57 }
 0x17c   :  { %1208 = vmax.xlane.f32.xlu1 %v2499_v19 }
 0x17d   :  { %v2548_v59 = vpop.xlane.xlu1 %728 }
 0x17e   :  { %1170 = vmax.xlane.f32.xlu0 %v2488_v14  ;;  %3396 = vst [vmem:[#allocation27_spill] sm:$0xff] %v2548_v59  ;;  %v2552_v61 = vpop.xlane.xlu0 %730 }
 0x17f   :  { %3397 = vst [vmem:[#allocation28_spill] sm:$0xff] %v2552_v61 }
 0x180   :  { %1172 = vmax.xlane.f32.xlu1 %v2497_v18 }
 0x181   :  { %v2555_v60 = vpop.xlane.xlu1 %732 }
 0x182   :  { %1202 = vmax.xlane.f32.xlu0 %v2494_v17  ;;  %3398 = vst [vmem:[#allocation29_spill] sm:$0xff] %v2555_v60  ;;  %v2559_v62 = vpop.xlane.xlu0 %734 }
 0x183   :  { %3399 = vst [vmem:[#allocation30_spill] sm:$0xff] %v2559_v62 }
 0x184   :  { %1204 = vmax.xlane.f32.xlu1 %v2501_v20 }
 0x185   :  { %v2562_v57 = vpop.xlane.xlu1 %736 }
 0x186   :  { %1182 = vmax.xlane.f32.xlu0 %v2505_v21  ;;  %3400 = vst [vmem:[#allocation31_spill] sm:$0xff] %v2562_v57  ;;  %v2565_v59 = vpop.xlane.xlu0 %738 }
 0x187   :  { %3401 = vst [vmem:[#allocation32_spill] sm:$0xff] %v2565_v59 }
 0x188   :  { %1184 = vmax.xlane.f32.xlu1 %v2512_v26 }
 0x18a   :  { %1214 = vmax.xlane.f32.xlu0 %v2510_v23  ;;  %v2567_v23 = vpop.xlane.xlu1 %740  ;;  %v2569_v61 = vpop.xlane.xlu0 %742 }
 0x18b   :  { %3402 = vst [vmem:[#allocation33_spill] sm:$0xff] %v2567_v23  ;;  %3403 = vst [vmem:[#allocation34_spill] sm:$0xff] %v2569_v61  ;;  %v746_v23 = vlaneseq }
 0x18c   :  { %1216 = vmax.xlane.f32.xlu1 %v2519_v31 }
 0x18d   :  { %v2585_v17 = vshrl.u32 %v746_v23, 7 }
 0x18e   :  { %1178 = vmax.xlane.f32.xlu0 %v2508_v22  ;;  %v2571_v31 = vpop.xlane.xlu1 %744 }
 0x18f   :  { %3404 = vst [vmem:[#allocation35_spill] sm:$0xff] %v2571_v31 }
 0x190   :  { %1180 = vmax.xlane.f32.xlu1 %v2517_v28 }
 0x192   :  { %1210 = vmax.xlane.f32.xlu0 %v2514_v27 }
 0x194   :  { %1212 = vmax.xlane.f32.xlu1 %v2521_v32 }
 0x1a3   :  { %v823_v60 = vpop.xlane.xlu0 %822 }
 0x1a5   :  { %v825_v22 = vpop.xlane.xlu1 %824 }
 0x1a7   :  { %v855_v26 = vpop.xlane.xlu0 %854 }
 0x1a8   :  { %v2573_v28 = vmax.f32 %v823_v60, %v855_v26 }
 0x1a9   :  { %v857_v62 = vpop.xlane.xlu1 %856 }
 0x1aa   :  { %v900_v27 = vsub.f32 %v2349_v0, %v2573_v28  ;;  %v964_v57 = vsub.f32 %v2351_v1, %v2573_v28  ;;  %v2579_v32 = vmax.f32 %v825_v22, %v857_v62  ;;  %v2589_v22 = vand.u32 127, %v746_v23 }
 0x1ab   :  { %v819_v59 = vpop.xlane.xlu0 %818 }
 0x1ac   :  { %v918_v21 = vmul.f32 1.442695, %v900_v27  ;;  %v982_v61 = vmul.f32 1.442695, %v964_v57  ;;  %v901_v31 = vsub.f32 %v2356_v3, %v2579_v32  ;;  %v965_v60 = vsub.f32 %v2360_v5, %v2579_v32 }
 0x1ad   :  { %v821_v26 = vpop.xlane.xlu1 %820  ;;  %v2610_v27 = vadd.s32 24, %v2585_v17  ;;  %vm784_vm5 = vcmp.ne.s32.totalorder %v2589_v22, %v2585_v17 }
 0x1ae   :  { %1867 = vpow2.f32 %v918_v21  ;;  %v920_v20 = vmul.f32 1.442695, %v901_v31  ;;  %v984_v18 = vmul.f32 1.442695, %v965_v60 }
 0x1af   :  { %1869 = vpow2.f32 %v982_v61  ;;  %v851_v0 = vpop.xlane.xlu0 %850  ;;  %v2600_v61 = vstv %s3321_s0  ;;  %vm787_vm2 = vcmp.ne.s32.totalorder %v2589_v22, %v2610_v27 }
 0x1b0   :  { %1871 = vpow2.f32 %v920_v20  ;;  %v2587_v1 = vmax.f32 %v819_v59, %v851_v0  ;;  %v2603_v59 = vadd.s32 16, %v2585_v17  ;;  %vm2614_vm0 = vcmp.lt.s32.totalorder %v2589_v22, %v2600_v61 }
 0x1b1   :  { %v853_v62 = vpop.xlane.xlu1 %852  ;;  %1873 = vpow2.f32 %v984_v18  ;;  %vm2649_vm4 = vmand %vm2614_vm0, %vm787_vm2 }
 0x1b2   :  { %v898_v3 = vsub.f32 %v2354_v2, %v2587_v1  ;;  %v962_v5 = vsub.f32 %v2358_v4, %v2587_v1  ;;  %v2595_v57 = vmax.f32 %v821_v26, %v853_v62  ;;  %vm786_vm1 = vcmp.ne.s32.totalorder %v2589_v22, %v2603_v59  ;;  %vm2679_vm7 = vmand %vm2614_vm0, %vm784_vm5 }
 0x1b3   :  { %v831_v21 = vpop.xlane.xlu0 %830  ;;  %vm2634_vm3 = vmand %vm2614_vm0, %vm786_vm1 }
 0x1b4   :  { %3405 = vst [vmem:[#allocation36_spill] sm:$0xff] %v2595_v57  ;;  %v914_v20 = vmul.f32 1.442695, %v898_v3  ;;  %v978_v23 = vmul.f32 1.442695, %v962_v5  ;;  %v899_v18 = vsub.f32 %v2363_v6, %v2595_v57  ;;  %v963_v2 = vsub.f32 %v2365_v8, %v2595_v57 }
 0x1b5   :  { %v833_v4 = vpop.xlane.xlu1 %832 }
 0x1b6   :  { %1875 = vpow2.f32 %v914_v20  ;;  %v916_v31 = vmul.f32 1.442695, %v899_v18  ;;  %v980_v60 = vmul.f32 1.442695, %v963_v2 }
 0x1b7   :  { %1877 = vpow2.f32 %v978_v23  ;;  %v863_v0 = vpop.xlane.xlu0 %862 }
 0x1b8   :  { %v1868_v6 = vpop.eup %1867  ;;  %1879 = vpow2.f32 %v916_v31  ;;  %v2620_v8 = vmax.f32 %v831_v21, %v863_v0  ;;  %v3455_v21 = vld [vmem:[#allocation5_spill] sm:$0xff] }
 0x1b9   :  { %v1870_v62 = vpop.eup %1869  ;;  %v865_v3 = vpop.xlane.xlu1 %864  ;;  %v948_v5 = vsel %vm2614_vm0, %v1868_v6, 0.0  ;;  %1881 = vpow2.f32 %v980_v60 }
 0x1ba   :  { %3408 = vst [vmem:[#allocation37_spill] sm:$0xff] %v2620_v8  ;;  %v1872_v20 = vpop.eup %1871  ;;  %v904_v23 = vsub.f32 %v2369_v9, %v2620_v8  ;;  %v968_v18 = vsub.f32 %v2374_v11, %v2620_v8  ;;  %v2630_v2 = vmax.f32 %v833_v4, %v865_v3  ;;  %1030 = vadd.xlane.f32.xlu0 %v948_v5  ;;  %v1012_v5 = vsel %vm2634_vm3, %v1870_v62, 0.0 }
 0x1bb   :  { %v827_v31 = vpop.xlane.xlu0 %826  ;;  %v949_v0 = vsel %vm2614_vm0, %v1872_v20, 0.0  ;;  %v1874_v60 = vpop.eup %1873  ;;  %v2656_v20 = vadd.s32 8, %v2585_v17 }
 0x1bc   :  { %3409 = vst [vmem:[#allocation38_spill] sm:$0xff] %v2630_v2  ;;  %v926_v6 = vmul.f32 1.442695, %v904_v23  ;;  %v990_v57 = vmul.f32 1.442695, %v968_v18  ;;  %v905_v9 = vsub.f32 %v2376_v12, %v2630_v2  ;;  %v969_v11 = vsub.f32 %v2383_v25, %v2630_v2  ;;  %1032 = vadd.xlane.f32.xlu1 %v949_v0 }
 0x1bd   :  { %v829_v3 = vpop.xlane.xlu1 %828  ;;  %v1013_v18 = vsel %vm2649_vm4, %v1874_v60, 0.0  ;;  %vm785_vm6 = vcmp.ne.s32.totalorder %v2589_v22, %v2656_v20 }
 0x1be   :  { %1883 = vpow2.f32 %v926_v6  ;;  %v928_v12 = vmul.f32 1.442695, %v905_v9  ;;  %v992_v25 = vmul.f32 1.442695, %v969_v11  ;;  %1062 = vadd.xlane.f32.xlu0 %v1012_v5  ;;  %vm2697_vm8 = vmand %vm2614_vm0, %vm785_vm6 }
 0x1bf   :  { %1885 = vpow2.f32 %v990_v57  ;;  %v859_v23 = vpop.xlane.xlu0 %858 }
 0x1c0   :  { %v1876_v0 = vpop.eup %1875  ;;  %1887 = vpow2.f32 %v928_v12  ;;  %v2662_v2 = vmax.f32 %v827_v31, %v859_v23  ;;  %1064 = vadd.xlane.f32.xlu1 %v1013_v18  ;;  %v3459_v31 = vld [vmem:[#allocation7_spill] sm:$0xff] }
 0x1c1   :  { %v1878_v62 = vpop.eup %1877  ;;  %v861_v8 = vpop.xlane.xlu1 %860  ;;  %v946_v6 = vsel %vm2614_vm0, %v1876_v0, 0.0  ;;  %1889 = vpow2.f32 %v992_v25 }
 0x1c2   :  { %3414 = vst [vmem:[#allocation39_spill] sm:$0xff] %v2662_v2  ;;  %v1880_v57 = vpop.eup %1879  ;;  %v902_v60 = vsub.f32 %v2372_v10, %v2662_v2  ;;  %v966_v9 = vsub.f32 %v2378_v13, %v2662_v2  ;;  %v2672_v11 = vmax.f32 %v829_v3, %v861_v8  ;;  %1026 = vadd.xlane.f32.xlu0 %v946_v6  ;;  %v2686_v10 = vadd.s32 48, %v2585_v17 }
 0x1c3   :  { %v839_v5 = vpop.xlane.xlu0 %838  ;;  %v947_v12 = vsel %vm2614_vm0, %v1880_v57, 0.0  ;;  %v1882_v13 = vpop.eup %1881  ;;  %v1010_v6 = vsel %vm2679_vm7, %v1878_v62, 0.0  ;;  %v2704_v57 = vadd.s32 56, %v2585_v17 }
 0x1c4   :  { %3415 = vst [vmem:[#allocation40_spill] sm:$0xff] %v2672_v11  ;;  %v922_v8 = vmul.f32 1.442695, %v902_v60  ;;  %v986_v3 = vmul.f32 1.442695, %v966_v9  ;;  %v903_v25 = vsub.f32 %v2381_v24, %v2672_v11  ;;  %v967_v23 = vsub.f32 %v2385_v29, %v2672_v11  ;;  %1028 = vadd.xlane.f32.xlu1 %v947_v12 }
 0x1c5   :  { %v841_v0 = vpop.xlane.xlu1 %840  ;;  %v1011_v9 = vsel %vm2697_vm8, %v1882_v13, 0.0  ;;  %vm790_vm9 = vcmp.ne.s32.totalorder %v2589_v22, %v2686_v10  ;;  %vm791_vm10 = vcmp.ne.s32.totalorder %v2589_v22, %v2704_v57 }
 0x1c6   :  { %1891 = vpow2.f32 %v922_v8  ;;  %v924_v24 = vmul.f32 1.442695, %v903_v25  ;;  %v988_v29 = vmul.f32 1.442695, %v967_v23  ;;  %1058 = vadd.xlane.f32.xlu0 %v1010_v6  ;;  %vm2727_vm11 = vmand %vm2614_vm0, %vm790_vm9 }
 0x1c7   :  { %1893 = vpow2.f32 %v986_v3  ;;  %v871_v60 = vpop.xlane.xlu0 %870  ;;  %vm2745_vm12 = vmand %vm2614_vm0, %vm791_vm10 }
 0x1c8   :  { %v1884_v12 = vpop.eup %1883  ;;  %1895 = vpow2.f32 %v924_v24  ;;  %v2710_v11 = vmax.f32 %v839_v5, %v871_v60  ;;  %1060 = vadd.xlane.f32.xlu1 %v1011_v9 }
 0x1c9   :  { %v1886_v62 = vpop.eup %1885  ;;  %v873_v2 = vpop.xlane.xlu1 %872  ;;  %v952_v8 = vsel %vm2614_vm0, %v1884_v12, 0.0  ;;  %1897 = vpow2.f32 %v988_v29 }
 0x1ca   :  { %3420 = vst [vmem:[#allocation41_spill] sm:$0xff] %v2710_v11  ;;  %v1888_v3 = vpop.eup %1887  ;;  %v908_v13 = vsub.f32 %v2389_v30, %v2710_v11  ;;  %v972_v25 = vsub.f32 %v2394_v34, %v2710_v11  ;;  %v2720_v23 = vmax.f32 %v841_v0, %v873_v2  ;;  %1038 = vadd.xlane.f32.xlu0 %v952_v8  ;;  %v2734_v30 = vadd.s32 32, %v2585_v17 }
 0x1cb   :  { %v835_v6 = vpop.xlane.xlu0 %834  ;;  %v953_v24 = vsel %vm2614_vm0, %v1888_v3, 0.0  ;;  %v1890_v34 = vpop.eup %1889  ;;  %v1016_v8 = vsel %vm2727_vm11, %v1886_v62, 0.0  ;;  %v2752_v3 = vadd.s32 40, %v2585_v17 }
 0x1cc   :  { %3421 = vst [vmem:[#allocation42_spill] sm:$0xff] %v2720_v23  ;;  %v934_v2 = vmul.f32 1.442695, %v908_v13  ;;  %v998_v0 = vmul.f32 1.442695, %v972_v25  ;;  %v909_v29 = vsub.f32 %v2396_v35, %v2720_v23  ;;  %v973_v60 = vsub.f32 %v2403_v38, %v2720_v23  ;;  %1040 = vadd.xlane.f32.xlu1 %v953_v24 }
 0x1cd   :  { %v837_v12 = vpop.xlane.xlu1 %836  ;;  %v1017_v25 = vsel %vm2745_vm12, %v1890_v34, 0.0  ;;  %vm788_vm13 = vcmp.ne.s32.totalorder %v2589_v22, %v2734_v30  ;;  %vm789_vm14 = vcmp.ne.s32.totalorder %v2589_v22, %v2752_v3 }
 0x1ce   :  { %1899 = vpow2.f32 %v934_v2  ;;  %v936_v35 = vmul.f32 1.442695, %v909_v29  ;;  %v1000_v38 = vmul.f32 1.442695, %v973_v60  ;;  %1070 = vadd.xlane.f32.xlu0 %v1016_v8  ;;  %vm2775_vm15 = vmand %vm2614_vm0, %vm788_vm13 }
 0x1cf   :  { %1901 = vpow2.f32 %v998_v0  ;;  %v867_v13 = vpop.xlane.xlu0 %866  ;;  %vm2793_vm1 = vmand %vm2614_vm0, %vm789_vm14 }
 0x1d0   :  { %v1892_v24 = vpop.eup %1891  ;;  %1903 = vpow2.f32 %v936_v35  ;;  %v2758_v23 = vmax.f32 %v835_v6, %v867_v13  ;;  %1072 = vadd.xlane.f32.xlu1 %v1017_v25  ;;  %v3461_v6 = vld [vmem:[#allocation10_spill] sm:$0xff] }
 0x1d1   :  { %v1894_v62 = vpop.eup %1893  ;;  %v869_v11 = vpop.xlane.xlu1 %868  ;;  %v950_v2 = vsel %vm2614_vm0, %v1892_v24, 0.0  ;;  %1905 = vpow2.f32 %v1000_v38 }
 0x1d2   :  { %3426 = vst [vmem:[#allocation43_spill] sm:$0xff] %v2758_v23  ;;  %v1896_v0 = vpop.eup %1895  ;;  %v906_v34 = vsub.f32 %v2392_v33, %v2758_v23  ;;  %v970_v29 = vsub.f32 %v2398_v36, %v2758_v23  ;;  %v2768_v60 = vmax.f32 %v837_v12, %v869_v11  ;;  %1034 = vadd.xlane.f32.xlu0 %v950_v2  ;;  %v2782_v33 = vadd.s32 80, %v2585_v17 }
 0x1d3   :  { %v847_v8 = vpop.xlane.xlu0 %846  ;;  %v951_v35 = vsel %vm2614_vm0, %v1896_v0, 0.0  ;;  %v1898_v36 = vpop.eup %1897  ;;  %v1014_v2 = vsel %vm2775_vm15, %v1894_v62, 0.0  ;;  %v2800_v0 = vadd.s32 88, %v2585_v17 }
 0x1d4   :  { %3427 = vst [vmem:[#allocation44_spill] sm:$0xff] %v2768_v60  ;;  %v930_v11 = vmul.f32 1.442695, %v906_v34  ;;  %v994_v12 = vmul.f32 1.442695, %v970_v29  ;;  %v907_v38 = vsub.f32 %v2401_v37, %v2768_v60  ;;  %v971_v13 = vsub.f32 %v2405_v39, %v2768_v60  ;;  %1036 = vadd.xlane.f32.xlu1 %v951_v35 }
 0x1d5   :  { %v849_v24 = vpop.xlane.xlu1 %848  ;;  %v1015_v29 = vsel %vm2793_vm1, %v1898_v36, 0.0  ;;  %vm794_vm2 = vcmp.ne.s32.totalorder %v2589_v22, %v2782_v33  ;;  %vm795_vm5 = vcmp.ne.s32.totalorder %v2589_v22, %v2800_v0 }
 0x1d6   :  { %1907 = vpow2.f32 %v930_v11  ;;  %v932_v37 = vmul.f32 1.442695, %v907_v38  ;;  %v996_v39 = vmul.f32 1.442695, %v971_v13  ;;  %1066 = vadd.xlane.f32.xlu0 %v1014_v2  ;;  %vm2823_vm6 = vmand %vm2614_vm0, %vm794_vm2 }
 0x1d7   :  { %1909 = vpow2.f32 %v994_v12  ;;  %v879_v34 = vpop.xlane.xlu0 %878  ;;  %vm2841_vm9 = vmand %vm2614_vm0, %vm795_vm5 }
 0x1d8   :  { %v1900_v35 = vpop.eup %1899  ;;  %1911 = vpow2.f32 %v932_v37  ;;  %v2806_v60 = vmax.f32 %v847_v8, %v879_v34  ;;  %1068 = vadd.xlane.f32.xlu1 %v1015_v29 }
 0x1d9   :  { %v1902_v62 = vpop.eup %1901  ;;  %v881_v23 = vpop.xlane.xlu1 %880  ;;  %v956_v11 = vsel %vm2614_vm0, %v1900_v35, 0.0  ;;  %1913 = vpow2.f32 %v996_v39 }
 0x1da   :  { %3432 = vst [vmem:[#allocation45_spill] sm:$0xff] %v2806_v60  ;;  %v1904_v12 = vpop.eup %1903  ;;  %v912_v36 = vsub.f32 %v2409_v40, %v2806_v60  ;;  %v976_v38 = vsub.f32 %v2414_v42, %v2806_v60  ;;  %v2816_v13 = vmax.f32 %v849_v24, %v881_v23  ;;  %1046 = vadd.xlane.f32.xlu0 %v956_v11  ;;  %v2830_v40 = vadd.s32 64, %v2585_v17 }
 0x1db   :  { %v843_v2 = vpop.xlane.xlu0 %842  ;;  %v957_v37 = vsel %vm2614_vm0, %v1904_v12, 0.0  ;;  %v1906_v42 = vpop.eup %1905  ;;  %v1020_v11 = vsel %vm2823_vm6, %v1902_v62, 0.0  ;;  %v2848_v12 = vadd.s32 72, %v2585_v17 }
 0x1dc   :  { %3433 = vst [vmem:[#allocation46_spill] sm:$0xff] %v2816_v13  ;;  %v942_v23 = vmul.f32 1.442695, %v912_v36  ;;  %v1006_v24 = vmul.f32 1.442695, %v976_v38  ;;  %v913_v39 = vsub.f32 %v2416_v43, %v2816_v13  ;;  %v977_v34 = vsub.f32 %v2423_v46, %v2816_v13  ;;  %1048 = vadd.xlane.f32.xlu1 %v957_v37 }
 0x1dd   :  { %v845_v35 = vpop.xlane.xlu1 %844  ;;  %v1021_v38 = vsel %vm2841_vm9, %v1906_v42, 0.0  ;;  %vm792_vm10 = vcmp.ne.s32.totalorder %v2589_v22, %v2830_v40  ;;  %vm793_vm13 = vcmp.ne.s32.totalorder %v2589_v22, %v2848_v12 }
 0x1de   :  { %1915 = vpow2.f32 %v942_v23  ;;  %v944_v43 = vmul.f32 1.442695, %v913_v39  ;;  %v1008_v46 = vmul.f32 1.442695, %v977_v34  ;;  %1078 = vadd.xlane.f32.xlu0 %v1020_v11  ;;  %vm2871_vm14 = vmand %vm2614_vm0, %vm792_vm10 }
 0x1df   :  { %1917 = vpow2.f32 %v1006_v24  ;;  %v875_v36 = vpop.xlane.xlu0 %874  ;;  %vm2889_vm2 = vmand %vm2614_vm0, %vm793_vm13 }
 0x1e0   :  { %v1908_v37 = vpop.eup %1907  ;;  %1919 = vpow2.f32 %v944_v43  ;;  %v2854_v13 = vmax.f32 %v843_v2, %v875_v36  ;;  %1080 = vadd.xlane.f32.xlu1 %v1021_v38 }
 0x1e1   :  { %v1910_v62 = vpop.eup %1909  ;;  %v877_v60 = vpop.xlane.xlu1 %876  ;;  %v954_v23 = vsel %vm2614_vm0, %v1908_v37, 0.0  ;;  %1921 = vpow2.f32 %v1008_v46 }
 0x1e2   :  { %3438 = vst [vmem:[#allocation47_spill] sm:$0xff] %v2854_v13  ;;  %v1912_v24 = vpop.eup %1911  ;;  %v910_v42 = vsub.f32 %v2412_v41, %v2854_v13  ;;  %v974_v39 = vsub.f32 %v2418_v44, %v2854_v13  ;;  %v2864_v34 = vmax.f32 %v845_v35, %v877_v60  ;;  %1042 = vadd.xlane.f32.xlu0 %v954_v23  ;;  %v2878_v41 = vadd.s32 112, %v2585_v17 }
 0x1e3   :  { %v1159_v11 = vpop.xlane.xlu0 %1158  ;;  %v955_v43 = vsel %vm2614_vm0, %v1912_v24, 0.0  ;;  %v1914_v44 = vpop.eup %1913  ;;  %v1018_v23 = vsel %vm2871_vm14, %v1910_v62, 0.0  ;;  %v2896_v24 = vadd.s32 120, %v2585_v17 }
 0x1e4   :  { %3439 = vst [vmem:[#allocation48_spill] sm:$0xff] %v2864_v34  ;;  %3442 = vst [vmem:[#allocation49_spill] sm:$0xff] %v2878_v41  ;;  %v938_v60 = vmul.f32 1.442695, %v910_v42  ;;  %v1002_v35 = vmul.f32 1.442695, %v974_v39  ;;  %v911_v46 = vsub.f32 %v2421_v45, %v2864_v34  ;;  %v975_v36 = vsub.f32 %v2425_v47, %v2864_v34  ;;  %1044 = vadd.xlane.f32.xlu1 %v955_v43 }
 0x1e5   :  { %v1161_v37 = vpop.xlane.xlu1 %1160  ;;  %3445 = vst [vmem:[#allocation50_spill] sm:$0xff] %v2896_v24  ;;  %v1019_v39 = vsel %vm2889_vm2, %v1914_v44, 0.0  ;;  %vm798_vm5 = vcmp.ne.s32.totalorder %v2589_v22, %v2878_v41  ;;  %vm799_vm10 = vcmp.ne.s32.totalorder %v2589_v22, %v2896_v24 }
 0x1e6   :  { %1923 = vpow2.f32 %v938_v60  ;;  %v940_v45 = vmul.f32 1.442695, %v911_v46  ;;  %v1004_v47 = vmul.f32 1.442695, %v975_v36  ;;  %1074 = vadd.xlane.f32.xlu0 %v1018_v23  ;;  %vm2919_vm13 = vmand %vm2614_vm0, %vm798_vm5 }
 0x1e7   :  { %1925 = vpow2.f32 %v1002_v35  ;;  %v1191_v42 = vpop.xlane.xlu0 %1190  ;;  %vm2937_vm5 = vmand %vm2614_vm0, %vm799_vm10 }
 0x1e8   :  { %v1916_v43 = vpop.eup %1915  ;;  %1927 = vpow2.f32 %v940_v45  ;;  %v2902_v34 = vmax.f32 %v1159_v11, %v1191_v42  ;;  %1076 = vadd.xlane.f32.xlu1 %v1019_v39  ;;  %v3446_v11 = vmov 0  ;;  %v3448_v39 = vmov 0 }
 0x1e9   :  { %v1918_v62 = vpop.eup %1917  ;;  %v1193_v13 = vpop.xlane.xlu1 %1192  ;;  %v960_v60 = vsel %vm2614_vm0, %v1916_v43, 0.0  ;;  %1929 = vpow2.f32 %v1004_v47  ;;  %v3447_v11 = vsel %vm2919_vm13, 4294967295, %v3446_v11  ;;  %v3449_v39 = vsel %vm2937_vm5, 4294967295, %v3448_v39 }
 0x1ea   :  { %v1920_v35 = vpop.eup %1919  ;;  %v1236_v44 = vsub.f32 %v2445_v48, %v2902_v34  ;;  %v1300_v46 = vsub.f32 %v2447_v49, %v2902_v34  ;;  %v2912_v36 = vmax.f32 %v1161_v37, %v1193_v13  ;;  %1054 = vadd.xlane.f32.xlu0 %v960_v60  ;;  %v2926_v48 = vadd.s32 96, %v2585_v17 }
 0x1eb   :  { %v1155_v23 = vpop.xlane.xlu0 %1154  ;;  %v961_v45 = vsel %vm2614_vm0, %v1920_v35, 0.0  ;;  %v1922_v49 = vpop.eup %1921  ;;  %v1024_v60 = vsel %vm2919_vm13, %v1918_v62, 0.0  ;;  %v2944_v35 = vadd.s32 104, %v2585_v17 }
 0x1ec   :  { %v1254_v13 = vmul.f32 1.442695, %v1236_v44  ;;  %v1318_v37 = vmul.f32 1.442695, %v1300_v46  ;;  %v1237_v47 = vsub.f32 %v2452_v51, %v2912_v36  ;;  %v1301_v42 = vsub.f32 %v2456_v53, %v2912_v36  ;;  %1056 = vadd.xlane.f32.xlu1 %v961_v45 }
 0x1ed   :  { %v1157_v43 = vpop.xlane.xlu1 %1156  ;;  %3450 = vst [vmem:[#allocation51_spill] sm:$0xff] %v2944_v35  ;;  %v1025_v46 = vsel %vm2937_vm5, %v1922_v49, 0.0  ;;  %vm796_vm10 = vcmp.ne.s32.totalorder %v2589_v22, %v2926_v48  ;;  %vm797_vm13 = vcmp.ne.s32.totalorder %v2589_v22, %v2944_v35 }
 0x1ee   :  { %1931 = vpow2.f32 %v1254_v13  ;;  %v1256_v51 = vmul.f32 1.442695, %v1237_v47  ;;  %v1320_v53 = vmul.f32 1.442695, %v1301_v42  ;;  %1086 = vadd.xlane.f32.xlu0 %v1024_v60  ;;  %vm2967_vm5 = vmand %vm2614_vm0, %vm796_vm10 }
 0x1ef   :  { %1933 = vpow2.f32 %v1318_v37  ;;  %v1187_v44 = vpop.xlane.xlu0 %1186  ;;  %vm2982_vm10 = vmand %vm2614_vm0, %vm797_vm13  ;;  %vm1498_vm13 = vcmp.lt.s32.totalorder %v2830_v40, %v2600_v61 }
 0x1f0   :  { %v1924_v45 = vpop.eup %1923  ;;  %1935 = vpow2.f32 %v1256_v51  ;;  %v2950_v24 = vmax.f32 %v1155_v23, %v1187_v44  ;;  %1088 = vadd.xlane.f32.xlu1 %v1025_v46 }
 0x1f1   :  { %v1926_v62 = vpop.eup %1925  ;;  %v1189_v41 = vpop.xlane.xlu1 %1188  ;;  %v958_v13 = vsel %vm2614_vm0, %v1924_v45, 0.0  ;;  %1937 = vpow2.f32 %v1320_v53 }
 0x1f2   :  { %v1928_v37 = vpop.eup %1927  ;;  %v1234_v49 = vsub.f32 %v2450_v50, %v2950_v24  ;;  %v1298_v47 = vsub.f32 %v2454_v52, %v2950_v24  ;;  %v2960_v42 = vmax.f32 %v1157_v43, %v1189_v41  ;;  %1050 = vadd.xlane.f32.xlu0 %v958_v13  ;;  %v1022_v45 = vsel %vm2967_vm5, %v1926_v62, 0.0 }
 0x1f3   :  { %v1167_v60 = vpop.xlane.xlu0 %1166  ;;  %v959_v51 = vsel %vm2614_vm0, %v1928_v37, 0.0  ;;  %v1930_v50 = vpop.eup %1929 }
 0x1f4   :  { %v1250_v53 = vmul.f32 1.442695, %v1234_v49  ;;  %v1314_v44 = vmul.f32 1.442695, %v1298_v47  ;;  %v1235_v52 = vsub.f32 %v2459_v54, %v2960_v42  ;;  %v1299_v41 = vsub.f32 %v2461_v55, %v2960_v42  ;;  %1052 = vadd.xlane.f32.xlu1 %v959_v51 }
 0x1f5   :  { %v1169_v46 = vpop.xlane.xlu1 %1168  ;;  %v1023_v37 = vsel %vm2982_vm10, %v1930_v50, 0.0 }
 0x1f6   :  { %1939 = vpow2.f32 %v1250_v53  ;;  %v1252_v13 = vmul.f32 1.442695, %v1235_v52  ;;  %v1316_v54 = vmul.f32 1.442695, %v1299_v41  ;;  %1082 = vadd.xlane.f32.xlu0 %v1022_v45 }
 0x1f7   :  { %1941 = vpow2.f32 %v1314_v44  ;;  %v1199_v55 = vpop.xlane.xlu0 %1198 }
 0x1f8   :  { %v1932_v22 = vpop.eup %1931  ;;  %1943 = vpow2.f32 %v1252_v13  ;;  %v2990_v49 = vmax.f32 %v1167_v60, %v1199_v55  ;;  %1084 = vadd.xlane.f32.xlu1 %v1023_v37 }
 0x1f9   :  { %v1934_v47 = vpop.eup %1933  ;;  %v1201_v51 = vpop.xlane.xlu1 %1200  ;;  %v1284_v35 = vsel %vm2634_vm3, %v1932_v22, 0.0  ;;  %1945 = vpow2.f32 %v1316_v54  ;;  %v3456_v54 = vld [vmem:[#allocation8_spill] sm:$0xff]  ;;  %vm3471_vm3 = vnez %v3447_v11 }
 0x1fa   :  { %v1936_v62 = vpop.eup %1935  ;;  %v1240_v53 = vsub.f32 %v2465_v56, %v2990_v49  ;;  %v1304_v44 = vsub.f32 %v2470_v58, %v2990_v49  ;;  %v2998_v52 = vmax.f32 %v1169_v46, %v1201_v51  ;;  %1366 = vadd.xlane.f32.xlu0 %v1284_v35  ;;  %v1348_v58 = vsel %vm2614_vm0, %v1934_v47, 0.0 }
 0x1fb   :  { %v1163_v50 = vpop.xlane.xlu0 %1162  ;;  %v1285_v60 = vsel %vm2649_vm4, %v1936_v62, 0.0  ;;  %v1938_v41 = vpop.eup %1937  ;;  %vm3472_vm4 = vnez %v3449_v39 }
 0x1fc   :  { %v1262_v45 = vmul.f32 1.442695, %v1240_v53  ;;  %v1326_v13 = vmul.f32 1.442695, %v1304_v44  ;;  %v1241_v55 = vsub.f32 %v3455_v21, %v2998_v52  ;;  %v1305_v37 = vsub.f32 %v3456_v54, %v2998_v52  ;;  %1368 = vadd.xlane.f32.xlu1 %v1285_v60 }
 0x1fd   :  { %v1165_v56 = vpop.xlane.xlu1 %1164  ;;  %v1349_v22 = vsel %vm2614_vm0, %v1938_v41, 0.0 }
 0x1fe   :  { %1947 = vpow2.f32 %v1262_v45  ;;  %v1264_v35 = vmul.f32 1.442695, %v1241_v55  ;;  %v1328_v46 = vmul.f32 1.442695, %v1305_v37  ;;  %1398 = vadd.xlane.f32.xlu0 %v1348_v58  ;;  %v3457_v45 = vld [vmem:[#allocation4_spill] sm:$0xff] }
 0x1ff   :  { %1949 = vpow2.f32 %v1326_v13  ;;  %v1195_v4 = vpop.xlane.xlu0 %1194  ;;  %v3458_v13 = vld [vmem:[#allocation6_spill] sm:$0xff] }
 0x200   :  { %v1940_v51 = vpop.eup %1939  ;;  %1951 = vpow2.f32 %v1264_v35  ;;  %v3010_v62 = vmax.f32 %v1163_v50, %v1195_v4  ;;  %1400 = vadd.xlane.f32.xlu1 %v1349_v22 }
 0x201   :  { %v1942_v53 = vpop.eup %1941  ;;  %v1197_v44 = vpop.xlane.xlu1 %1196  ;;  %v1282_v60 = vsel %vm2679_vm7, %v1940_v51, 0.0  ;;  %1953 = vpow2.f32 %v1328_v46  ;;  %vm1570_vm7 = vcmask 7168  }
 0x202   :  { %v1944_v47 = vpop.eup %1943  ;;  %v1238_v21 = vsub.f32 %v3457_v45, %v3010_v62  ;;  %v1302_v55 = vsub.f32 %v3458_v13, %v3010_v62  ;;  %v3018_v54 = vmax.f32 %v1165_v56, %v1197_v44  ;;  %1362 = vadd.xlane.f32.xlu0 %v1282_v60  ;;  %v1346_v56 = vsel %vm2614_vm0, %v1942_v53, 0.0 }
 0x203   :  { %v1175_v41 = vpop.xlane.xlu0 %1174  ;;  %v1283_v50 = vsel %vm2697_vm8, %v1944_v47, 0.0  ;;  %v1946_v37 = vpop.eup %1945  ;;  %vm1493_vm8 = vcmp.lt.s32.totalorder %v2610_v27, %v2600_v61 }
 0x204   :  { %v1258_v58 = vmul.f32 1.442695, %v1238_v21  ;;  %v1322_v35 = vmul.f32 1.442695, %v1302_v55  ;;  %v1239_v4 = vsub.f32 %v3459_v31, %v3018_v54  ;;  %v1303_v46 = vsub.f32 %v2481_v63, %v3018_v54  ;;  %1364 = vadd.xlane.f32.xlu1 %v1283_v50 }
 0x205   :  { %v1177_v22 = vpop.xlane.xlu1 %1176  ;;  %v1347_v60 = vsel %vm2614_vm0, %v1946_v37, 0.0 }
 0x206   :  { %1955 = vpow2.f32 %v1258_v58  ;;  %v1260_v51 = vmul.f32 1.442695, %v1239_v4  ;;  %v1324_v44 = vmul.f32 1.442695, %v1303_v46  ;;  %1394 = vadd.xlane.f32.xlu0 %v1346_v56 }
 0x207   :  { %1957 = vpow2.f32 %v1322_v35  ;;  %v1207_v18 = vpop.xlane.xlu0 %1206 }
 0x208   :  { %v1948_v47 = vpop.eup %1947  ;;  %1959 = vpow2.f32 %v1260_v51  ;;  %v3030_v45 = vmax.f32 %v1175_v41, %v1207_v18  ;;  %1396 = vadd.xlane.f32.xlu1 %v1347_v60 }
 0x209   :  { %v1950_v63 = vpop.eup %1949  ;;  %v1209_v21 = vpop.xlane.xlu1 %1208  ;;  %v1288_v13 = vsel %vm2727_vm11, %v1948_v47, 0.0  ;;  %1961 = vpow2.f32 %v1324_v44  ;;  %vm1490_vm11 = vcmp.lt.s32.totalorder %v2585_v17, %v2600_v61 }
 0x20a   :  { %v1952_v53 = vpop.eup %1951  ;;  %v1244_v55 = vsub.f32 %v2485_v7, %v3030_v45  ;;  %v1308_v50 = vsub.f32 %v2490_v15, %v3030_v45  ;;  %v3038_v58 = vmax.f32 %v1177_v22, %v1209_v21  ;;  %1374 = vadd.xlane.f32.xlu0 %v1288_v13  ;;  %v1352_v15 = vsel %vm2614_vm0, %v1950_v63, 0.0  ;;  %v3460_v21 = vld [vmem:[#allocation9_spill] sm:$0xff] }
 0x20b   :  { %v1171_v37 = vpop.xlane.xlu0 %1170  ;;  %v1289_v41 = vsel %vm2745_vm12, %v1952_v53, 0.0  ;;  %v1954_v35 = vpop.eup %1953  ;;  %vm1491_vm12 = vcmp.lt.s32.totalorder %v2656_v20, %v2600_v61 }
 0x20c   :  { %v1270_v31 = vmul.f32 1.442695, %v1244_v55  ;;  %v1334_v4 = vmul.f32 1.442695, %v1308_v50  ;;  %v1245_v5 = vsub.f32 %v2492_v16, %v3038_v58  ;;  %v1309_v46 = vsub.f32 %v2499_v19, %v3038_v58  ;;  %1376 = vadd.xlane.f32.xlu1 %v1289_v41 }
 0x20d   :  { %v1173_v7 = vpop.xlane.xlu1 %1172  ;;  %v1353_v51 = vsel %vm2614_vm0, %v1954_v35, 0.0 }
 0x20e   :  { %1963 = vpow2.f32 %v1270_v31  ;;  %v1272_v22 = vmul.f32 1.442695, %v1245_v5  ;;  %v1336_v56 = vmul.f32 1.442695, %v1309_v46  ;;  %1406 = vadd.xlane.f32.xlu0 %v1352_v15 }
 0x20f   :  { %1965 = vpow2.f32 %v1334_v4  ;;  %v1203_v9 = vpop.xlane.xlu0 %1202  ;;  %v3462_v4 = vld [vmem:[#allocation11_spill] sm:$0xff] }
 0x210   :  { %v1956_v44 = vpop.eup %1955  ;;  %1967 = vpow2.f32 %v1272_v22  ;;  %v3050_v16 = vmax.f32 %v1171_v37, %v1203_v9  ;;  %1408 = vadd.xlane.f32.xlu1 %v1353_v51 }
 0x211   :  { %v1958_v19 = vpop.eup %1957  ;;  %v1205_v18 = vpop.xlane.xlu1 %1204  ;;  %v1286_v60 = vsel %vm2775_vm15, %v1956_v44, 0.0  ;;  %1969 = vpow2.f32 %v1336_v56  ;;  %vm1496_vm15 = vcmp.lt.s32.totalorder %v2686_v10, %v2600_v61 }
 0x212   :  { %v1960_v47 = vpop.eup %1959  ;;  %v1242_v63 = vsub.f32 %v2488_v14, %v3050_v16  ;;  %v1306_v13 = vsub.f32 %v3460_v21, %v3050_v16  ;;  %v3058_v53 = vmax.f32 %v1173_v7, %v1205_v18  ;;  %1370 = vadd.xlane.f32.xlu0 %v1286_v60  ;;  %v1350_v46 = vsel %vm2614_vm0, %v1958_v19, 0.0  ;;  %v3463_v60 = vld [vmem:[#allocation12_spill] sm:$0xff] }
 0x213   :  { %v1183_v55 = vpop.xlane.xlu0 %1182  ;;  %v1287_v50 = vsel %vm2793_vm1, %v1960_v47, 0.0  ;;  %v1962_v37 = vpop.eup %1961  ;;  %vm1497_vm1 = vcmp.lt.s32.totalorder %v2704_v57, %v2600_v61 }
 0x214   :  { %v1266_v41 = vmul.f32 1.442695, %v1242_v63  ;;  %v1330_v35 = vmul.f32 1.442695, %v1306_v13  ;;  %v1243_v31 = vsub.f32 %v3461_v6, %v3058_v53  ;;  %v1307_v5 = vsub.f32 %v3462_v4, %v3058_v53  ;;  %1372 = vadd.xlane.f32.xlu1 %v1287_v50 }
 0x215   :  { %v1185_v14 = vpop.xlane.xlu1 %1184  ;;  %v1351_v22 = vsel %vm2614_vm0, %v1962_v37, 0.0  ;;  %v3464_v37 = vld [vmem:[#allocation15_spill] sm:$0xff] }
 0x216   :  { %1971 = vpow2.f32 %v1266_v41  ;;  %v1268_v7 = vmul.f32 1.442695, %v1243_v31  ;;  %v1332_v15 = vmul.f32 1.442695, %v1307_v5  ;;  %1402 = vadd.xlane.f32.xlu0 %v1350_v46 }
 0x217   :  { %1973 = vpow2.f32 %v1330_v35  ;;  %v1215_v25 = vpop.xlane.xlu0 %1214 }
 0x218   :  { %v1964_v56 = vpop.eup %1963  ;;  %1975 = vpow2.f32 %v1268_v7  ;;  %v3070_v9 = vmax.f32 %v1183_v55, %v1215_v25  ;;  %1404 = vadd.xlane.f32.xlu1 %v1351_v22  ;;  %v3465_v25 = vld [vmem:[#allocation13_spill] sm:$0xff] }
 0x219   :  { %v1966_v51 = vpop.eup %1965  ;;  %v1217_v44 = vpop.xlane.xlu1 %1216  ;;  %v1292_v18 = vsel %vm2823_vm6, %v1964_v56, 0.0  ;;  %1977 = vpow2.f32 %v1332_v15  ;;  %v3466_v56 = vld [vmem:[#allocation16_spill] sm:$0xff]  ;;  %vm1494_vm6 = vcmp.lt.s32.totalorder %v2734_v30, %v2600_v61 }
 0x21a   :  { %v1968_v19 = vpop.eup %1967  ;;  %v1248_v47 = vsub.f32 %v3463_v60, %v3070_v9  ;;  %v3076_v63 = vmax.f32 %v1185_v14, %v1217_v44  ;;  %1382 = vadd.xlane.f32.xlu0 %v1292_v18  ;;  %v1356_v35 = vsel %vm2614_vm0, %v1966_v51, 0.0  ;;  %v3467_v18 = vld [vmem:[#allocation14_spill] sm:$0xff] }
 0x21b   :  { %v1179_v21 = vpop.xlane.xlu0 %1178  ;;  %v1293_v13 = vsel %vm2841_vm9, %v1968_v19, 0.0  ;;  %v1970_v55 = vpop.eup %1969  ;;  %v1312_v19 = vsub.f32 %v3467_v18, %v3070_v9  ;;  %vm1495_vm9 = vcmp.lt.s32.totalorder %v2752_v3, %v2600_v61 }
 0x21c   :  { %v1278_v50 = vmul.f32 1.442695, %v1248_v47  ;;  %v1249_v41 = vsub.f32 %v3464_v37, %v3076_v63  ;;  %1384 = vadd.xlane.f32.xlu1 %v1293_v13  ;;  %v1357_v4 = vsel %vm2614_vm0, %v1970_v55, 0.0  ;;  %v3468_v13 = vld [vmem:[#allocation17_spill] sm:$0xff] }
 0x21d   :  { %v1181_v8 = vpop.xlane.xlu1 %1180 }
 0x21e   :  { %1979 = vpow2.f32 %v1278_v50  ;;  %v1280_v6 = vmul.f32 1.442695, %v1249_v41  ;;  %1414 = vadd.xlane.f32.xlu0 %v1356_v35  ;;  %v3469_v50 = vld [vmem:[#allocation19_spill] sm:$0xff] }
 0x21f   :  { %v1211_v31 = vpop.xlane.xlu0 %1210 }
 0x220   :  { %v1972_v5 = vpop.eup %1971  ;;  %1981 = vpow2.f32 %v1280_v6  ;;  %v3086_v29 = vmax.f32 %v1179_v21, %v1211_v31  ;;  %1416 = vadd.xlane.f32.xlu1 %v1357_v4 }
 0x221   :  { %v1974_v14 = vpop.eup %1973  ;;  %v1213_v46 = vpop.xlane.xlu1 %1212  ;;  %v1290_v7 = vsel %vm2871_vm14, %v1972_v5, 0.0  ;;  %v1342_v5 = vmul.f32 1.442695, %v1312_v19  ;;  %vm1500_vm14 = vcmp.lt.s32.totalorder %v2782_v33, %v2600_v61 }
 0x222   :  { %v1976_v15 = vpop.eup %1975  ;;  %v1246_v22 = vsub.f32 %v3465_v25, %v3086_v29  ;;  %v1310_v51 = vsub.f32 %v3466_v56, %v3086_v29  ;;  %v3094_v44 = vmax.f32 %v1181_v8, %v1213_v46  ;;  %1378 = vadd.xlane.f32.xlu0 %v1290_v7  ;;  %v1354_v41 = vsel %vm2614_vm0, %v1974_v14, 0.0  ;;  %v3470_v8 = vld [vmem:[#allocation18_spill] sm:$0xff] }
 0x223   :  { %v1291_v60 = vsel %vm2889_vm2, %v1976_v15, 0.0  ;;  %v1978_v47 = vpop.eup %1977  ;;  %v1313_v35 = vsub.f32 %v3470_v8, %v3076_v63  ;;  %vm1501_vm2 = vcmp.lt.s32.totalorder %v2800_v0, %v2600_v61 }
 0x224   :  { %v1274_v21 = vmul.f32 1.442695, %v1246_v22  ;;  %v1338_v2 = vmul.f32 1.442695, %v1310_v51  ;;  %v1247_v55 = vsub.f32 %v3468_v13, %v3094_v44  ;;  %v1311_v37 = vsub.f32 %v3469_v50, %v3094_v44  ;;  %1380 = vadd.xlane.f32.xlu1 %v1291_v60 }
 0x225   :  { %v1355_v31 = vsel %vm2614_vm0, %v1978_v47, 0.0  ;;  %v1344_v14 = vmul.f32 1.442695, %v1313_v35 }
 0x226   :  { %1983 = vpow2.f32 %v1274_v21  ;;  %v1276_v6 = vmul.f32 1.442695, %v1247_v55  ;;  %v1340_v38 = vmul.f32 1.442695, %v1311_v37  ;;  %1410 = vadd.xlane.f32.xlu0 %v1354_v41 }
 0x227   :  { %1985 = vpow2.f32 %v1338_v2 }
 0x228   :  { %v1980_v4 = vpop.eup %1979  ;;  %1987 = vpow2.f32 %v1276_v6  ;;  %1412 = vadd.xlane.f32.xlu1 %v1355_v31 }
 0x229   :  { %v1296_v46 = vsel %vm3471_vm3, %v1980_v4, 0.0  ;;  %1989 = vpow2.f32 %v1340_v38 }
 0x22a   :  { %v1982_v7 = vpop.eup %1981  ;;  %1390 = vadd.xlane.f32.xlu0 %v1296_v46  ;;  %1991 = vpow2.f32 %v1342_v5 }
 0x22b   :  { %v1297_v15 = vsel %vm3472_vm4, %v1982_v7, 0.0  ;;  %1993 = vpow2.f32 %v1344_v14 }
 0x22c   :  { %1392 = vadd.xlane.f32.xlu1 %v1297_v15 }
 0x230   :  { %v1984_v25 = vpop.eup %1983 }
 0x231   :  { %v1986_v22 = vpop.eup %1985  ;;  %v1294_v56 = vsel %vm2967_vm5, %v1984_v25, 0.0  ;;  %vm1499_vm5 = vcmp.lt.s32.totalorder %v2848_v12, %v2600_v61 }
 0x232   :  { %v1988_v51 = vpop.eup %1987  ;;  %1386 = vadd.xlane.f32.xlu0 %v1294_v56  ;;  %v1358_v19 = vsel %vm2614_vm0, %v1986_v22, 0.0 }
 0x233   :  { %v1295_v11 = vsel %vm2982_vm10, %v1988_v51, 0.0  ;;  %v1990_v18 = vpop.eup %1989  ;;  %vm1502_vm10 = vcmp.lt.s32.totalorder %v2926_v48, %v2600_v61 }
 0x234   :  { %1388 = vadd.xlane.f32.xlu1 %v1295_v11  ;;  %v1992_v39 = vpop.eup %1991  ;;  %v1359_v60 = vsel %vm2614_vm0, %v1990_v18, 0.0 }
 0x235   :  { %v1994_v47 = vpop.eup %1993  ;;  %v1360_v23 = vsel %vm2614_vm0, %v1992_v39, 0.0 }
 0x236   :  { %1418 = vadd.xlane.f32.xlu0 %v1358_v19  ;;  %v1361_v43 = vsel %vm2614_vm0, %v1994_v47, 0.0  ;;  %vm1492_vm0 = vcmp.lt.s32.totalorder %v2603_v59, %v2600_v61 }
 0x238   :  { %1420 = vadd.xlane.f32.xlu1 %v1359_v60 }
 0x23a   :  { %1422 = vadd.xlane.f32.xlu0 %v1360_v23 }
 0x23c   :  { %1424 = vadd.xlane.f32.xlu1 %v1361_v43 }
 0x247   :  { %v1031_v21 = vpop.xlane.xlu0 %1030 }
 0x249   :  { %v1033_v2 = vpop.xlane.xlu1 %1032 }
 0x24b   :  { %v1063_v13 = vpop.xlane.xlu0 %1062 }
 0x24c   :  { %v1092_v55 = vadd.f32 %v1063_v13, %v1031_v21 }
 0x24d   :  { %v1065_v50 = vpop.xlane.xlu1 %1064 }
 0x24e   :  { %v1093_v37 = vadd.f32 %v1065_v50, %v1033_v2  ;;  %1995 = vlog2.f32 %v1092_v55 }
 0x24f   :  { %v1027_v41 = vpop.xlane.xlu0 %1026 }
 0x250   :  { %1997 = vlog2.f32 %v1093_v37 }
 0x251   :  { %v1029_v8 = vpop.xlane.xlu1 %1028 }
 0x253   :  { %v1059_v35 = vpop.xlane.xlu0 %1058 }
 0x254   :  { %v1090_v6 = vadd.f32 %v1059_v35, %v1027_v41 }
 0x255   :  { %v1061_v38 = vpop.xlane.xlu1 %1060 }
 0x256   :  { %v1091_v31 = vadd.f32 %v1061_v38, %v1029_v8 }
 0x257   :  { %v1039_v4 = vpop.xlane.xlu0 %1038 }
 0x259   :  { %v1041_v5 = vpop.xlane.xlu1 %1040 }
 0x25b   :  { %v1071_v46 = vpop.xlane.xlu0 %1070 }
 0x25c   :  { %v1096_v7 = vadd.f32 %v1071_v46, %v1039_v4 }
 0x25d   :  { %v1073_v14 = vpop.xlane.xlu1 %1072 }
 0x25e   :  { %v1097_v26 = vadd.f32 %v1073_v14, %v1041_v5 }
 0x25f   :  { %v1035_v15 = vpop.xlane.xlu0 %1034 }
 0x261   :  { %v1037_v25 = vpop.xlane.xlu1 %1036 }
 0x263   :  { %v1067_v22 = vpop.xlane.xlu0 %1066 }
 0x264   :  { %v3126_v56 = vadd.f32 %v1067_v22, %v1035_v15 }
 0x265   :  { %v1069_v51 = vpop.xlane.xlu1 %1068 }
 0x266   :  { %v3128_v11 = vadd.f32 %v1069_v51, %v1037_v25 }
 0x267   :  { %v1047_v18 = vpop.xlane.xlu0 %1046 }
 0x269   :  { %v1049_v19 = vpop.xlane.xlu1 %1048 }
 0x26b   :  { %v1079_v39 = vpop.xlane.xlu0 %1078 }
 0x26c   :  { %v3130_v60 = vadd.f32 %v1079_v39, %v1047_v18 }
 0x26d   :  { %v1081_v47 = vpop.xlane.xlu1 %1080 }
 0x26e   :  { %v3132_v23 = vadd.f32 %v1081_v47, %v1049_v19 }
 0x26f   :  { %v1043_v43 = vpop.xlane.xlu0 %1042 }
 0x271   :  { %v1045_v21 = vpop.xlane.xlu1 %1044 }
 0x273   :  { %v1075_v2 = vpop.xlane.xlu0 %1074 }
 0x274   :  { %v3134_v13 = vadd.f32 %v1075_v2, %v1043_v43 }
 0x275   :  { %v1077_v50 = vpop.xlane.xlu1 %1076 }
 0x276   :  { %v3136_v41 = vadd.f32 %v1077_v50, %v1045_v21 }
 0x277   :  { %v1055_v8 = vpop.xlane.xlu0 %1054 }
 0x279   :  { %v1057_v35 = vpop.xlane.xlu1 %1056 }
 0x27b   :  { %v1087_v38 = vpop.xlane.xlu0 %1086 }
 0x27c   :  { %v3138_v4 = vadd.f32 %v1087_v38, %v1055_v8 }
 0x27d   :  { %v1089_v5 = vpop.xlane.xlu1 %1088 }
 0x27e   :  { %v3140_v46 = vadd.f32 %v1089_v5, %v1057_v35  ;;  %v1996_v35 = vpop.eup %1995 }
 0x27f   :  { %v1051_v14 = vpop.xlane.xlu0 %1050  ;;  %v1998_v38 = vpop.eup %1997 }
 0x281   :  { %v1053_v15 = vpop.xlane.xlu1 %1052 }
 0x283   :  { %v1083_v25 = vpop.xlane.xlu0 %1082 }
 0x284   :  { %v3142_v22 = vadd.f32 %v1083_v25, %v1051_v14 }
 0x285   :  { %v1085_v51 = vpop.xlane.xlu1 %1084 }
 0x286   :  { %v3144_v18 = vadd.f32 %v1085_v51, %v1053_v15  ;;  %v1111_v15 = vmul.f32 0.6931472, %v1996_v35  ;;  %v1113_v51 = vmul.f32 0.6931472, %v1998_v38 }
 0x287   :  { %v1367_v19 = vpop.xlane.xlu0 %1366 }
 0x289   :  { %v1369_v39 = vpop.xlane.xlu1 %1368 }
 0x28b   :  { %v1399_v47 = vpop.xlane.xlu0 %1398 }
 0x28c   :  { %v1428_v43 = vadd.f32 %v1399_v47, %v1367_v19 }
 0x28d   :  { %v1401_v21 = vpop.xlane.xlu1 %1400 }
 0x28e   :  { %1999 = vlog2.f32 %v1428_v43  ;;  %v1429_v2 = vadd.f32 %v1401_v21, %v1369_v39 }
 0x28f   :  { %2001 = vlog2.f32 %v1090_v6  ;;  %v1363_v50 = vpop.xlane.xlu0 %1362  ;;  %v1140_v6 = vadd.f32 %v1111_v15, %v2573_v28 }
 0x290   :  { %2003 = vlog2.f32 %v1429_v2 }
 0x291   :  { %v1365_v8 = vpop.xlane.xlu1 %1364  ;;  %2005 = vlog2.f32 %v1091_v31  ;;  %v1141_v31 = vadd.f32 %v1113_v51, %v2579_v32 }
 0x293   :  { %v1395_v5 = vpop.xlane.xlu0 %1394 }
 0x294   :  { %v1426_v14 = vadd.f32 %v1395_v5, %v1363_v50 }
 0x295   :  { %v1397_v25 = vpop.xlane.xlu1 %1396 }
 0x296   :  { %2007 = vlog2.f32 %v1426_v14  ;;  %v1427_v55 = vadd.f32 %v1397_v25, %v1365_v8  ;;  %v3473_v8 = vld [vmem:[#allocation21_spill] sm:$0xff]  ;;  %v3474_v25 = vld [vmem:[#allocation23_spill] sm:$0xff] }
 0x297   :  { %2009 = vlog2.f32 %v1096_v7  ;;  %v1375_v37 = vpop.xlane.xlu0 %1374  ;;  %v1508_v5 = vsub.f32 %v1140_v6, %v3473_v8 }
 0x298   :  { %v2000_v19 = vpop.eup %1999  ;;  %2011 = vlog2.f32 %v1427_v55  ;;  %v1509_v55 = vsub.f32 %v1141_v31, %v3474_v25 }
 0x299   :  { %v2002_v47 = vpop.eup %2001  ;;  %2013 = vlog2.f32 %v1097_v26  ;;  %v1447_v39 = vmul.f32 0.6931472, %v2000_v19  ;;  %v1377_v43 = vpop.xlane.xlu1 %1376 }
 0x29a   :  { %v2004_v21 = vpop.eup %2003  ;;  %v1107_v14 = vmul.f32 0.6931472, %v2002_v47 }
 0x29b   :  { %v1476_v2 = vadd.f32 %v1447_v39, %v2902_v34  ;;  %v1449_v50 = vmul.f32 0.6931472, %v2004_v21  ;;  %v1407_v35 = vpop.xlane.xlu0 %1406  ;;  %v2006_v38 = vpop.eup %2005 }
 0x29c   :  { %v1432_v7 = vadd.f32 %v1407_v35, %v1375_v37  ;;  %v1109_v34 = vmul.f32 0.6931472, %v2006_v38 }
 0x29d   :  { %v1524_v28 = vsub.f32 %v1476_v2, %v3473_v8  ;;  %v1477_v26 = vadd.f32 %v1449_v50, %v2912_v36  ;;  %v1409_v15 = vpop.xlane.xlu1 %1408  ;;  %v1138_v36 = vadd.f32 %v1107_v14, %v2587_v1  ;;  %v3475_v2 = vld [vmem:[#allocation36_spill] sm:$0xff] }
 0x29e   :  { %2015 = vlog2.f32 %v1432_v7  ;;  %v1433_v32 = vadd.f32 %v1409_v15, %v1377_v43  ;;  %v1139_v50 = vadd.f32 %v1109_v34, %v3475_v2 }
 0x29f   :  { %2017 = vlog2.f32 %v3126_v56  ;;  %v1540_v51 = vadd.f32 %v1524_v28, %v1508_v5  ;;  %v1525_v19 = vsub.f32 %v1477_v26, %v3474_v25  ;;  %v1371_v37 = vpop.xlane.xlu0 %1370  ;;  %v3477_v25 = vld [vmem:[#allocation22_spill] sm:$0xff] }
 0x2a0   :  { %v2008_v39 = vpop.eup %2007  ;;  %2019 = vlog2.f32 %v1433_v32 }
 0x2a1   :  { %v2010_v47 = vpop.eup %2009  ;;  %v1556_v6 = vsel %vm1492_vm0, %v1540_v51, 0.0  ;;  %v1541_v43 = vadd.f32 %v1525_v19, %v1509_v55  ;;  %v1443_v21 = vmul.f32 0.6931472, %v2008_v39  ;;  %v1373_v31 = vpop.xlane.xlu1 %1372  ;;  %2021 = vlog2.f32 %v3128_v11  ;;  %v3476_v11 = vld [vmem:[#allocation20_spill] sm:$0xff] }
 0x2a2   :  { %v2012_v56 = vpop.eup %2011  ;;  %1573 = vst.msk [vmem:[%s3322_s3 + $0x10] sm:$0xff] %vm1570_vm7, %v1556_v6  ;;  %v1506_v8 = vsub.f32 %v1138_v36, %v3476_v11  ;;  %v1119_v5 = vmul.f32 0.6931472, %v2010_v47  ;;  %v1507_v55 = vsub.f32 %v1139_v50, %v3477_v25 }
 0x2a3   :  { %v2014_v27 = vpop.eup %2013  ;;  %v1557_v35 = vsel %vm1493_vm8, %v1541_v43, 0.0  ;;  %v1474_v1 = vadd.f32 %v1443_v21, %v2950_v24  ;;  %v1445_v38 = vmul.f32 0.6931472, %v2012_v56  ;;  %v1403_v59 = vpop.xlane.xlu0 %1402  ;;  %v3479_v21 = vld [vmem:[#allocation38_spill] sm:$0xff] }
 0x2a4   :  { %1574 = vst.msk [vmem:[%s3322_s3 + $0x18] sm:$0xff] %vm1570_vm7, %v1557_v35  ;;  %v1430_v7 = vadd.f32 %v1403_v59, %v1371_v37  ;;  %v1121_v15 = vmul.f32 0.6931472, %v2014_v27  ;;  %v3478_v37 = vld [vmem:[#allocation37_spill] sm:$0xff]  ;;  %v3480_v35 = vld [vmem:[#allocation26_spill] sm:$0xff] }
 0x2a5   :  { %v1522_v14 = vsub.f32 %v1474_v1, %v3476_v11  ;;  %v1475_v28 = vadd.f32 %v1445_v38, %v2960_v42  ;;  %v1405_v26 = vpop.xlane.xlu1 %1404  ;;  %v1144_v39 = vadd.f32 %v1119_v5, %v3478_v37 }
 0x2a6   :  { %2023 = vlog2.f32 %v1430_v7  ;;  %v1431_v24 = vadd.f32 %v1405_v26, %v1373_v31  ;;  %v1145_v31 = vadd.f32 %v1121_v15, %v3479_v21 }
 0x2a7   :  { %2025 = vlog2.f32 %v3130_v60  ;;  %v1538_v32 = vadd.f32 %v1522_v14, %v1506_v8  ;;  %v1523_v34 = vsub.f32 %v1475_v28, %v3477_v25  ;;  %v1383_v51 = vpop.xlane.xlu0 %1382  ;;  %v1512_v1 = vsub.f32 %v1144_v39, %v3480_v35 }
 0x2a8   :  { %v2016_v19 = vpop.eup %2015  ;;  %2027 = vlog2.f32 %v1431_v24  ;;  %v3482_v24 = vld [vmem:[#allocation39_spill] sm:$0xff] }
 0x2a9   :  { %v2018_v42 = vpop.eup %2017  ;;  %v1554_v47 = vsel %vm1490_vm11, %v1538_v32, 0.0  ;;  %v1539_v17 = vadd.f32 %v1523_v34, %v1507_v55  ;;  %v1455_v36 = vmul.f32 0.6931472, %v2016_v19  ;;  %v1385_v6 = vpop.xlane.xlu1 %1384  ;;  %2029 = vlog2.f32 %v3132_v23 }
 0x2aa   :  { %v2020_v43 = vpop.eup %2019  ;;  %1571 = vst.msk [vmem:[%s3322_s3] sm:$0xff] %vm1570_vm7, %v1554_v47  ;;  %v1115_v23 = vmul.f32 0.6931472, %v2018_v42 }
 0x2ab   :  { %v1555_v60 = vsel %vm1491_vm12, %v1539_v17, 0.0  ;;  %v1480_v20 = vadd.f32 %v1455_v36, %v2990_v49  ;;  %v1457_v56 = vmul.f32 0.6931472, %v2020_v43  ;;  %v1415_v27 = vpop.xlane.xlu0 %1414  ;;  %v2022_v2 = vpop.eup %2021  ;;  %v3481_v49 = vld [vmem:[#allocation27_spill] sm:$0xff] }
 0x2ac   :  { %1572 = vst.msk [vmem:[%s3322_s3 + $0x8] sm:$0xff] %vm1570_vm7, %v1555_v60  ;;  %v1436_v50 = vadd.f32 %v1415_v27, %v1383_v51  ;;  %v1513_v11 = vsub.f32 %v1145_v31, %v3481_v49  ;;  %v1117_v5 = vmul.f32 0.6931472, %v2022_v2  ;;  %v1142_v25 = vadd.f32 %v1115_v23, %v3482_v24  ;;  %v3485_v60 = vld [vmem:[#allocation25_spill] sm:$0xff] }
 0x2ad   :  { %v1528_v38 = vsub.f32 %v1480_v20, %v3480_v35  ;;  %v1481_v59 = vadd.f32 %v1457_v56, %v2998_v52  ;;  %v1417_v7 = vpop.xlane.xlu1 %1416 }
 0x2ae   :  { %2031 = vlog2.f32 %v1436_v50  ;;  %v1437_v8 = vadd.f32 %v1417_v7, %v1385_v6  ;;  %v3487_v7 = vld [vmem:[#allocation42_spill] sm:$0xff] }
 0x2af   :  { %2033 = vlog2.f32 %v3134_v13  ;;  %v1544_v14 = vadd.f32 %v1528_v38, %v1512_v1  ;;  %v1529_v28 = vsub.f32 %v1481_v59, %v3481_v49  ;;  %v1379_v26 = vpop.xlane.xlu0 %1378  ;;  %v3483_v13 = vld [vmem:[#allocation40_spill] sm:$0xff]  ;;  %v3486_v1 = vld [vmem:[#allocation41_spill] sm:$0xff] }
 0x2b0   :  { %v2024_v15 = vpop.eup %2023  ;;  %2035 = vlog2.f32 %v1437_v8  ;;  %v1143_v19 = vadd.f32 %v1117_v5, %v3483_v13 }
 0x2b1   :  { %v2026_v52 = vpop.eup %2025  ;;  %v1560_v10 = vsel %vm1496_vm15, %v1544_v14, 0.0  ;;  %v1545_v55 = vadd.f32 %v1529_v28, %v1513_v11  ;;  %v1451_v32 = vmul.f32 0.6931472, %v2024_v15  ;;  %v1381_v34 = vpop.xlane.xlu1 %1380  ;;  %2037 = vlog2.f32 %v3136_v41  ;;  %v3484_v41 = vld [vmem:[#allocation24_spill] sm:$0xff] }
 0x2b2   :  { %v2028_v51 = vpop.eup %2027  ;;  %1577 = vst.msk [vmem:[%s3322_s3 + $0x30] sm:$0xff] %vm1570_vm7, %v1560_v10  ;;  %v1510_v36 = vsub.f32 %v1142_v25, %v3484_v41  ;;  %v1127_v6 = vmul.f32 0.6931472, %v2026_v52  ;;  %v1511_v20 = vsub.f32 %v1143_v19, %v3485_v60  ;;  %v3490_v19 = vld [vmem:[#allocation43_spill] sm:$0xff] }
 0x2b3   :  { %v1561_v42 = vsel %vm1497_vm1, %v1545_v55, 0.0  ;;  %v1478_v57 = vadd.f32 %v1451_v32, %v3010_v62  ;;  %v1453_v37 = vmul.f32 0.6931472, %v2028_v51  ;;  %v1411_v39 = vpop.xlane.xlu0 %1410  ;;  %v2030_v47 = vpop.eup %2029 }
 0x2b4   :  { %1578 = vst.msk [vmem:[%s3322_s3 + $0x38] sm:$0xff] %vm1570_vm7, %v1561_v42  ;;  %v1434_v17 = vadd.f32 %v1411_v39, %v1379_v26  ;;  %v1129_v56 = vmul.f32 0.6931472, %v2030_v47  ;;  %v3488_v26 = vld [vmem:[#allocation30_spill] sm:$0xff]  ;;  %v3491_v47 = vld [vmem:[#allocation44_spill] sm:$0xff] }
 0x2b5   :  { %v1526_v43 = vsub.f32 %v1478_v57, %v3484_v41  ;;  %v1479_v21 = vadd.f32 %v1453_v37, %v3018_v54  ;;  %v1413_v31 = vpop.xlane.xlu1 %1412  ;;  %v1148_v54 = vadd.f32 %v1127_v6, %v3486_v1  ;;  %v3492_v6 = vld [vmem:[#allocation28_spill] sm:$0xff] }
 0x2b6   :  { %2039 = vlog2.f32 %v1434_v17  ;;  %v1435_v62 = vadd.f32 %v1413_v31, %v1381_v34  ;;  %v1149_v49 = vadd.f32 %v1129_v56, %v3487_v7 }
 0x2b7   :  { %v1542_v27 = vadd.f32 %v1526_v43, %v1510_v36  ;;  %v1527_v2 = vsub.f32 %v1479_v21, %v3485_v60  ;;  %v1391_v3 = vpop.xlane.xlu0 %1390  ;;  %v1516_v15 = vsub.f32 %v1148_v54, %v3488_v26 }
 0x2b8   :  { %v2032_v50 = vpop.eup %2031  ;;  %2041 = vlog2.f32 %v1435_v62  ;;  %v3493_v62 = vld [vmem:[#allocation29_spill] sm:$0xff] }
 0x2b9   :  { %v2034_v35 = vpop.eup %2033  ;;  %v1558_v23 = vsel %vm1494_vm6, %v1542_v27, 0.0  ;;  %v1543_v38 = vadd.f32 %v1527_v2, %v1511_v20  ;;  %v1463_v59 = vmul.f32 0.6931472, %v2032_v50  ;;  %v1393_v25 = vpop.xlane.xlu1 %1392  ;;  %2043 = vlog2.f32 %v3142_v22 }
 0x2ba   :  { %v2036_v30 = vpop.eup %2035  ;;  %1575 = vst.msk [vmem:[%s3322_s3 + $0x20] sm:$0xff] %vm1570_vm7, %v1558_v23  ;;  %v1123_v28 = vmul.f32 0.6931472, %v2034_v35  ;;  %2045 = vlog2.f32 %v3144_v18 }
 0x2bb   :  { %v1559_v11 = vsel %vm1495_vm9, %v1543_v38, 0.0  ;;  %v1484_v8 = vadd.f32 %v1463_v59, %v3030_v45  ;;  %v1465_v5 = vmul.f32 0.6931472, %v2036_v30  ;;  %v2038_v14 = vpop.eup %2037  ;;  %v3489_v45 = vld [vmem:[#allocation31_spill] sm:$0xff]  ;;  %2047 = vlog2.f32 %v3138_v4 }
 0x2bc   :  { %1576 = vst.msk [vmem:[%s3322_s3 + $0x28] sm:$0xff] %vm1570_vm7, %v1559_v11  ;;  %v1517_v10 = vsub.f32 %v1149_v49, %v3489_v45  ;;  %v1125_v55 = vmul.f32 0.6931472, %v2038_v14  ;;  %v1146_v42 = vadd.f32 %v1123_v28, %v3490_v19  ;;  %2049 = vlog2.f32 %v3140_v46  ;;  %v3494_v49 = vld [vmem:[#allocation47_spill] sm:$0xff]  ;;  %v3495_v14 = vld [vmem:[#allocation48_spill] sm:$0xff] }
 0x2bd   :  { %v1532_v52 = vsub.f32 %v1484_v8, %v3488_v26  ;;  %v1485_v24 = vadd.f32 %v1465_v5, %v3038_v58 }
 0x2be   :  { %v1147_v0 = vadd.f32 %v1125_v55, %v3491_v47  ;;  %v1514_v4 = vsub.f32 %v1146_v42, %v3492_v6  ;;  %v3499_v42 = vld [vmem:[#allocation33_spill] sm:$0xff]  ;;  %v3501_v47 = vld [vmem:[#allocation34_spill] sm:$0xff] }
 0x2bf   :  { %v1548_v32 = vadd.f32 %v1532_v52, %v1516_v15  ;;  %v1533_v34 = vsub.f32 %v1485_v24, %v3489_v45  ;;  %v1387_v51 = vpop.xlane.xlu0 %1386  ;;  %v3496_v24 = vld [vmem:[#allocation45_spill] sm:$0xff]  ;;  %v3497_v45 = vld [vmem:[#allocation32_spill] sm:$0xff] }
 0x2c0   :  { %v2040_v13 = vpop.eup %2039  ;;  %v1515_v60 = vsub.f32 %v1147_v0, %v3493_v62 }
 0x2c1   :  { %v1564_v58 = vsel %vm1500_vm14, %v1548_v32, 0.0  ;;  %v1549_v57 = vadd.f32 %v1533_v34, %v1517_v10  ;;  %v1459_v33 = vmul.f32 0.6931472, %v2040_v13  ;;  %v1389_v37 = vpop.xlane.xlu1 %1388  ;;  %v3498_v13 = vld [vmem:[#allocation46_spill] sm:$0xff] }
 0x2c2   :  { %v2042_v39 = vpop.eup %2041  ;;  %1581 = vst.msk [vmem:[%s3322_s3 + $0x50] sm:$0xff] %vm1570_vm7, %v1564_v58 }
 0x2c3   :  { %v1565_v17 = vsel %vm1501_vm2, %v1549_v57, 0.0  ;;  %v1482_v41 = vadd.f32 %v1459_v33, %v3050_v16  ;;  %v1461_v22 = vmul.f32 0.6931472, %v2042_v39  ;;  %v1419_v36 = vpop.xlane.xlu0 %1418  ;;  %v2044_v35 = vpop.eup %2043  ;;  %v3500_v39 = vld [vmem:[#allocation51_spill] sm:$0xff] }
 0x2c4   :  { %1582 = vst.msk [vmem:[%s3322_s3 + $0x58] sm:$0xff] %vm1570_vm7, %v1565_v17  ;;  %v1438_v18 = vadd.f32 %v1419_v36, %v1387_v51  ;;  %v2046_v1 = vpop.eup %2045  ;;  %v1131_v12 = vmul.f32 0.6931472, %v2044_v35  ;;  %vm1503_vm3 = vcmp.lt.s32.totalorder %v3500_v39, %v2600_v61 }
 0x2c5   :  { %v1530_v43 = vsub.f32 %v1482_v41, %v3492_v6  ;;  %v1483_v21 = vadd.f32 %v1461_v22, %v3058_v53  ;;  %v1421_v31 = vpop.xlane.xlu1 %1420  ;;  %v2048_v23 = vpop.eup %2047  ;;  %v1133_v38 = vmul.f32 0.6931472, %v2046_v1  ;;  %v3502_v22 = vld [vmem:[#allocation49_spill] sm:$0xff] }
 0x2c6   :  { %2051 = vlog2.f32 %v1438_v18  ;;  %v1439_v16 = vadd.f32 %v1421_v31, %v1389_v37  ;;  %v2050_v59 = vpop.eup %2049  ;;  %v1135_v7 = vmul.f32 0.6931472, %v2048_v23  ;;  %v1150_v11 = vadd.f32 %v1131_v12, %v3494_v49 }
 0x2c7   :  { %v1546_v20 = vadd.f32 %v1530_v43, %v1514_v4  ;;  %v1531_v56 = vsub.f32 %v1483_v21, %v3493_v62  ;;  %v1423_v27 = vpop.xlane.xlu0 %1422  ;;  %v1151_v28 = vadd.f32 %v1133_v38, %v3495_v14  ;;  %vm1504_vm4 = vcmp.lt.s32.totalorder %v3502_v22, %v2600_v61  ;;  %v3504_v43 = vld [vmem:[#allocation50_spill] sm:$0xff] }
 0x2c8   :  { %2053 = vlog2.f32 %v1439_v16  ;;  %v1440_v46 = vadd.f32 %v1423_v27, %v1391_v3  ;;  %v1137_v3 = vmul.f32 0.6931472, %v2050_v59  ;;  %v1518_v10 = vsub.f32 %v1150_v11, %v3497_v45 }
 0x2c9   :  { %v1562_v2 = vsel %vm1498_vm13, %v1546_v20, 0.0  ;;  %v1547_v50 = vadd.f32 %v1531_v56, %v1515_v60  ;;  %v1425_v53 = vpop.xlane.xlu1 %1424  ;;  %v1519_v58 = vsub.f32 %v1151_v28, %v3499_v42  ;;  %vm1505_vm0 = vcmp.lt.s32.totalorder %v3504_v43, %v2600_v61 }
 0x2ca   :  { %1579 = vst.msk [vmem:[%s3322_s3 + $0x40] sm:$0xff] %vm1570_vm7, %v1562_v2  ;;  %2055 = vlog2.f32 %v1440_v46  ;;  %v1441_v40 = vadd.f32 %v1425_v53, %v1393_v25  ;;  %v1152_v25 = vadd.f32 %v1135_v7, %v3496_v24  ;;  %v1153_v19 = vadd.f32 %v1137_v3, %v3498_v13 }
 0x2cb   :  { %v1563_v54 = vsel %vm1499_vm5, %v1547_v50, 0.0 }
 0x2cc   :  { %1580 = vst.msk [vmem:[%s3322_s3 + $0x48] sm:$0xff] %vm1570_vm7, %v1563_v54  ;;  %2057 = vlog2.f32 %v1441_v40 }
 0x2d0   :  { %v2052_v30 = vpop.eup %2051 }
 0x2d1   :  { %v1467_v8 = vmul.f32 0.6931472, %v2052_v30 }
 0x2d2   :  { %v2054_v5 = vpop.eup %2053 }
 0x2d3   :  { %v1486_v26 = vadd.f32 %v1467_v8, %v3086_v29  ;;  %v1469_v15 = vmul.f32 0.6931472, %v2054_v5 }
 0x2d4   :  { %v2056_v52 = vpop.eup %2055 }
 0x2d5   :  { %v1534_v55 = vsub.f32 %v1486_v26, %v3497_v45  ;;  %v1487_v32 = vadd.f32 %v1469_v15, %v3094_v44  ;;  %v1471_v34 = vmul.f32 0.6931472, %v2056_v52  ;;  %v1520_v44 = vsub.f32 %v1152_v25, %v3501_v47 }
 0x2d6   :  { %v2058_v51 = vpop.eup %2057 }
 0x2d7   :  { %v1550_v29 = vadd.f32 %v1534_v55, %v1518_v10  ;;  %v1535_v57 = vsub.f32 %v1487_v32, %v3499_v42  ;;  %v1488_v33 = vadd.f32 %v1471_v34, %v3070_v9  ;;  %v1473_v37 = vmul.f32 0.6931472, %v2058_v51  ;;  %v3503_v9 = vld [vmem:[#allocation35_spill] sm:$0xff] }
 0x2d8   :  { %v1521_v36 = vsub.f32 %v1153_v19, %v3503_v9 }
 0x2d9   :  { %v1566_v0 = vsel %vm1502_vm10, %v1550_v29, 0.0  ;;  %v1551_v17 = vadd.f32 %v1535_v57, %v1519_v58  ;;  %v1536_v41 = vsub.f32 %v1488_v33, %v3501_v47  ;;  %v1489_v48 = vadd.f32 %v1473_v37, %v3076_v63 }
 0x2da   :  { %1583 = vst.msk [vmem:[%s3322_s3 + $0x60] sm:$0xff] %vm1570_vm7, %v1566_v0 }
 0x2db   :  { %v1567_v18 = vsel %vm1503_vm3, %v1551_v17, 0.0  ;;  %v1552_v6 = vadd.f32 %v1536_v41, %v1520_v44  ;;  %v1537_v4 = vsub.f32 %v1489_v48, %v3503_v9 }
 0x2dc   :  { %1584 = vst.msk [vmem:[%s3322_s3 + $0x68] sm:$0xff] %vm1570_vm7, %v1567_v18 }
 0x2dd   :  { %v1568_v63 = vsel %vm1504_vm4, %v1552_v6, 0.0  ;;  %v1553_v21 = vadd.f32 %v1537_v4, %v1521_v36 }
 0x2de   :  { %1585 = vst.msk [vmem:[%s3322_s3 + $0x70] sm:$0xff] %vm1570_vm7, %v1568_v63 }
 0x2df   :  { %v1569_v31 = vsel %vm1505_vm0, %v1553_v21, 0.0 }
 0x2e0   :  { %1586 = vst.msk [vmem:[%s3322_s3 + $0x78] sm:$0xff] %vm1570_vm7, %v1569_v31 }

</bundles_post_ra>
